<compile_context>
chip_gen: v7x
topology: tpu7x:2x2x1
jax: 0.10.0
libtpu: 0.0.40
codegen_flags: <defaults>
</compile_context>

<pallas_src>
import functools

import jax
import jax.numpy as jnp
from jax import lax
from jax.experimental import pallas as pl
from jax.experimental.pallas import tpu as pltpu

_LANES = 128
_MAX_TILE_ROWS = 2048        # f32: 1 MiB per input block, bf16: 512 KiB
_FAST_PATH_ELEMS = 64 * 1024  # below this, a plain XLA reduction wins


def _iou_sums_kernel(x_ref, y_ref, prod_ref, sum_ref, *,
                     tile_rows, blocks_per_core, total_rows, num_blocks,
                     needs_mask):
    """Accumulate sum(x*y) and sum(x+y) into small (8,128) f32 accumulators."""
    c = pl.program_id(0)
    j = pl.program_id(1)

    @pl.when(j == 0)
    def _init():
        prod_ref[...] = jnp.zeros_like(prod_ref)
        sum_ref[...] = jnp.zeros_like(sum_ref)

    # Cast to f32 in-register (inputs may be bf16); accumulation is f32.
    x = x_ref[...].astype(jnp.float32)
    y = y_ref[...].astype(jnp.float32)

    def accumulate(xv, yv):
        # Fold the (tile_rows, 128) tile into the (8, 128) accumulators.
        # The reshape only regroups whole vregs and the axis-0 sum is pure
        # VPU vreg adds -- no XLU cross-lane work in the hot loop.
        p = (xv * yv).reshape(tile_rows // 8, 8, _LANES)
        s = (xv + yv).reshape(tile_rows // 8, 8, _LANES)
        prod_ref[...] += jnp.sum(p, axis=0)
        sum_ref[...] += jnp.sum(s, axis=0)

    if needs_mask:
        # Only the last row-block is ragged: mask it there, keep an unmasked
        # fast path for every interior block.
        block_idx = c * blocks_per_core + j
        is_edge = block_idx == (num_blocks - 1)

        @pl.when(jnp.logical_not(is_edge))
        def _interior():
            accumulate(x, y)

        @pl.when(is_edge)
        def _edge():
            start = block_idx * tile_rows
            row_ids = start + lax.broadcasted_iota(
                jnp.int32, (tile_rows, _LANES), 0)
            valid = row_ids < total_rows
            # Mask BEFORE any arithmetic: OOB rows may hold garbage
            # (NaN/Inf); a select tolerates it, a multiply/add does not.
            accumulate(jnp.where(valid, x, 0.0), jnp.where(valid, y, 0.0))
    else:
        accumulate(x, y)


def _is_multi_tensorcore_chip():
    """True on chips with 2 TensorCores per chip (v7x); False on v5e/v6e."""
    try:
        kind = jax.devices()[0].device_kind.lower()
    except Exception:
        return False
    return "v7" in kind


def iou(inputs, targets, smooth=1.0):
    """IoU * 100 of two same-shaped arrays (matches the PyTorch module)."""
    assert inputs.shape == targets.shape
    x = jnp.asarray(inputs)
    y = jnp.asarray(targets)

    def _canon(a):
        # Keep bf16 / f32 native through the kernel; fall back to f32.
        if a.dtype == jnp.float32 or a.dtype == jnp.bfloat16:
            return a
        return a.astype(jnp.float32)

    x = _canon(x).reshape(-1)
    y = _canon(y).reshape(-1)
    n = x.shape[0]

    def _epilogue(intersection, total):
        union = total - intersection
        return (intersection + smooth) / (union + smooth) * 100.0

    # Small-input fast path: pallas_call launch + partial writeback + epilogue
    # dominate for tiny tensors; a fused XLA reduction is strictly better.
    if n < _FAST_PATH_ELEMS:
        xf = x.astype(jnp.float32)
        yf = y.astype(jnp.float32)
        return _epilogue(jnp.sum(xf * yf), jnp.sum(xf + yf))

    # Lay the data out as a lane-dense (rows, 128) slab in native dtype.
    n_pad = pl.cdiv(n, _LANES) * _LANES
    if n_pad != n:
        # TODO(synk): this pad (< 128 zeros, zeros do not perturb either sum)
        # still copies both arrays; a fully copy-free path would need
        # element-granular masking over a manually DMA'd 1-D ref, which is
        # not worth it for this rare (numel % 128 != 0) case.
        x = jnp.pad(x, (0, n_pad - n))
        y = jnp.pad(y, (0, n_pad - n))
    rows = n_pad // _LANES
    x2 = x.reshape(rows, _LANES)
    y2 = y.reshape(rows, _LANES)

    # Tile size: up to 2048 rows (f32: 1 MiB / bf16: 512 KiB per input block),
    # rounded down to the native sublane granularity of the dtypes involved.
    g_rows = 16 if (x2.dtype == jnp.bfloat16 or y2.dtype == jnp.bfloat16) else 8
    tile_rows = min(_MAX_TILE_ROWS, rows)
    tile_rows = max(g_rows, (tile_rows // g_rows) * g_rows)
    num_blocks = pl.cdiv(rows, tile_rows)
    needs_mask = (rows % tile_rows) != 0

    # Split the row-block range across both TensorCores only on multi-TC
    # chips (v7x) and only when it splits evenly: no clamped/phantom block,
    # no duplicate DMA, and interior tiles never pay the mask.
    num_cores = 2 if (_is_multi_tensorcore_chip()
                      and num_blocks >= 2 and num_blocks % 2 == 0) else 1
    blocks_per_core = num_blocks // num_cores

    kernel = functools.partial(
        _iou_sums_kernel,
        tile_rows=tile_rows,
        blocks_per_core=blocks_per_core,
        total_rows=rows,
        num_blocks=num_blocks,
        needs_mask=needs_mask,
    )

    if num_cores == 2:
        # TODO(synk): verify with xprof that CORE_PARALLEL actually shards the
        # leading axis across the two v7x TensorCores.
        dim_sem = (pltpu.CORE_PARALLEL, pltpu.ARBITRARY)
    else:
        dim_sem = ("arbitrary", "arbitrary")

    in_bytes = rows * _LANES * (x2.dtype.itemsize + y2.dtype.itemsize)
    cost = pl.CostEstimate(
        flops=2 * rows * _LANES,
        transcendentals=0,
        bytes_accessed=in_bytes + 2 * num_cores * 8 * _LANES * 4,
    )

    in_map = lambda c, j: (c * blocks_per_core + j, 0)
    acc_sds = jax.ShapeDtypeStruct((num_cores, 8, _LANES), jnp.float32)

    prod_part, sum_part = pl.pallas_call(
        kernel,
        out_shape=(acc_sds, acc_sds),
        grid_spec=pltpu.PrefetchScalarGridSpec(
            num_scalar_prefetch=0,
            grid=(num_cores, blocks_per_core),
            in_specs=[
                pl.BlockSpec((tile_rows, _LANES), in_map),
                pl.BlockSpec((tile_rows, _LANES), in_map),
            ],
            out_specs=(
                pl.BlockSpec((None, 8, _LANES), lambda c, j: (c, 0, 0)),
                pl.BlockSpec((None, 8, _LANES), lambda c, j: (c, 0, 0)),
            ),
        ),
        compiler_params=pltpu.CompilerParams(dimension_semantics=dim_sem),
        cost_estimate=cost,
    )(x2, y2)

    # Tiny epilogue in plain JAX: final cross-lane reduce of two (8,128)
    # partials per core + scalar math (respects the runtime `smooth`).
    return _epilogue(jnp.sum(prod_part), jnp.sum(sum_part))


if __name__ == "__main__":
    def ref_iou(a, b, smooth=1.0):
        af = jnp.asarray(a, jnp.float32)
        bf = jnp.asarray(b, jnp.float32)
        inter = jnp.sum(af * bf)
        total = jnp.sum(af + bf)
        union = total - inter
        return (inter + smooth) / (union + smooth) * 100.0

    key = jax.random.PRNGKey(0)
    ks = jax.random.split(key, 8)

    # Case 1: small NCHW probabilities vs binary mask (tiny -> fast path).
    x1 = jax.nn.sigmoid(jax.random.normal(ks[0], (2, 4, 16, 16), jnp.float32))
    y1 = (jax.random.uniform(ks[1], (2, 4, 16, 16)) > 0.5).astype(jnp.float32)
    got1 = iou(x1, y1)
    jax.block_until_ready(got1)
    want1 = ref_iou(x1, y1)
    assert jnp.allclose(got1, want1, rtol=1e-5, atol=1e-4), (got1, want1)

    # Case 2: bf16 inputs, single-block kernel path.
    x2 = jax.nn.sigmoid(
        jax.random.normal(ks[2], (2, 4, 160, 144), jnp.float32)).astype(jnp.bfloat16)
    y2 = (jax.random.uniform(ks[3], (2, 4, 160, 144)) > 0.5).astype(jnp.bfloat16)
    got2 = iou(x2, y2)
    jax.block_until_ready(got2)
    want2 = ref_iou(x2, y2)
    assert jnp.allclose(got2, want2, rtol=1e-3, atol=1e-2), (got2, want2)

    # Case 3: multi-block f32 with a ragged last block (edge-only mask) and a
    # non-default smooth value.
    x3 = jax.nn.sigmoid(jax.random.normal(ks[4], (2, 4, 192, 208), jnp.float32))
    y3 = (jax.random.uniform(ks[5], (2, 4, 192, 208)) > 0.5).astype(jnp.float32)
    got3 = iou(x3, y3, smooth=2.0)
    jax.block_until_ready(got3)
    want3 = ref_iou(x3, y3, smooth=2.0)
    assert jnp.allclose(got3, want3, rtol=1e-4, atol=1e-3), (got3, want3)

    # Case 4: element count not a multiple of 128 -> pad-to-lane branch plus
    # ragged last block.
    x4 = jax.nn.sigmoid(jax.random.normal(ks[6], (2, 4, 97, 130), jnp.float32))
    y4 = (jax.random.uniform(ks[7], (2, 4, 97, 130)) > 0.5).astype(jnp.float32)
    got4 = iou(x4, y4)
    jax.block_until_ready(got4)
    want4 = ref_iou(x4, y4)
    assert jnp.allclose(got4, want4, rtol=1e-4, atol=1e-3), (got4, want4)

    print("KERNEL_OK")
</pallas_src>

<mosaic_0001>
module attributes {stable_mosaic.version = 11 : i64} {
  func.func @_iou_sums_kernel(%arg0: i32, %arg1: i32, %arg2: memref<1440x128xbf16, #tpu.memory_space<vmem>>, %arg3: memref<1440x128xbf16, #tpu.memory_space<vmem>>, %arg4: memref<1x8x128xf32, #tpu.memory_space<vmem>>, %arg5: memref<1x8x128xf32, #tpu.memory_space<vmem>>) attributes {dimension_semantics = [#tpu.dimension_semantics<arbitrary>, #tpu.dimension_semantics<arbitrary>], iteration_bounds = array<i64: 1, 1>, scalar_prefetch = 0 : i64, scratch_operands = 0 : i64, tpu.core_type = #tpu.core_type<tc>, window_params = [{transform_indices = @transform_0, window_bounds = array<i64: 1440, 128>}, {transform_indices = @transform_1, window_bounds = array<i64: 1440, 128>}, {transform_indices = @transform_2, window_bounds = array<i64: 1, 8, 128>}, {transform_indices = @transform_3, window_bounds = array<i64: 1, 8, 128>}]} {
    %c0_i32 = arith.constant 0 : i32
    %0 = arith.cmpi eq, %arg1, %c0_i32 : i32
    %1 = arith.extui %0 : i1 to i32
    %c0_i32_0 = arith.constant 0 : i32
    %2 = arith.cmpi ne, %1, %c0_i32_0 : i32
    scf.if %2 {
      %cst_17 = arith.constant 0.000000e+00 : f32
      %25 = vector.broadcast %cst_17 : f32 to vector<8x128xf32>
      %c0_18 = arith.constant 0 : index
      %c0_19 = arith.constant 0 : index
      %c0_20 = arith.constant 0 : index
      %26 = vector.load %arg4[%c0_18, %c0_19, %c0_20] : memref<1x8x128xf32, #tpu.memory_space<vmem>>, vector<1x8x128xf32>
      %27 = vector.shape_cast %26 : vector<1x8x128xf32> to vector<8x128xf32>
      %28 = vector.shape_cast %25 : vector<8x128xf32> to vector<1x8x128xf32>
      tpu.vector_store %arg4[%c0_18, %c0_19, %c0_20], %28 {strides = array<i32>} : memref<1x8x128xf32, #tpu.memory_space<vmem>>, vector<1x8x128xf32>,
      %cst_21 = arith.constant 0.000000e+00 : f32
      %29 = vector.broadcast %cst_21 : f32 to vector<8x128xf32>
      %c0_22 = arith.constant 0 : index
      %c0_23 = arith.constant 0 : index
      %c0_24 = arith.constant 0 : index
      %30 = vector.load %arg5[%c0_22, %c0_23, %c0_24] : memref<1x8x128xf32, #tpu.memory_space<vmem>>, vector<1x8x128xf32>
      %31 = vector.shape_cast %30 : vector<1x8x128xf32> to vector<8x128xf32>
      %32 = vector.shape_cast %29 : vector<8x128xf32> to vector<1x8x128xf32>
      tpu.vector_store %arg5[%c0_22, %c0_23, %c0_24], %32 {strides = array<i32>} : memref<1x8x128xf32, #tpu.memory_space<vmem>>, vector<1x8x128xf32>,
    } else {
    }
    %c0 = arith.constant 0 : index
    %c0_1 = arith.constant 0 : index
    %3 = vector.load %arg2[%c0, %c0_1] : memref<1440x128xbf16, #tpu.memory_space<vmem>>, vector<1440x128xbf16>
    %4 = arith.extf %3 : vector<1440x128xbf16> to vector<1440x128xf32>
    %c0_2 = arith.constant 0 : index
    %c0_3 = arith.constant 0 : index
    %5 = vector.load %arg3[%c0_2, %c0_3] : memref<1440x128xbf16, #tpu.memory_space<vmem>>, vector<1440x128xbf16>
    %6 = arith.extf %5 : vector<1440x128xbf16> to vector<1440x128xf32>
    %7 = arith.mulf %4, %6 : vector<1440x128xf32>
    %8 = vector.shape_cast %7 : vector<1440x128xf32> to vector<180x8x128xf32>
    %9 = arith.addf %4, %6 : vector<1440x128xf32>
    %10 = vector.shape_cast %9 : vector<1440x128xf32> to vector<180x8x128xf32>
    %c0_4 = arith.constant 0 : index
    %c0_5 = arith.constant 0 : index
    %c0_6 = arith.constant 0 : index
    %11 = vector.load %arg4[%c0_4, %c0_5, %c0_6] : memref<1x8x128xf32, #tpu.memory_space<vmem>>, vector<1x8x128xf32>
    %12 = vector.shape_cast %11 : vector<1x8x128xf32> to vector<8x128xf32>
    %cst = arith.constant dense<0.000000e+00> : vector<8x128xf32>
    %13 = vector.multi_reduction <add>, %8, %cst [0] : vector<180x8x128xf32> to vector<8x128xf32>
    %14 = arith.addf %12, %13 : vector<8x128xf32>
    %c0_7 = arith.constant 0 : index
    %c0_8 = arith.constant 0 : index
    %c0_9 = arith.constant 0 : index
    %15 = vector.load %arg4[%c0_7, %c0_8, %c0_9] : memref<1x8x128xf32, #tpu.memory_space<vmem>>, vector<1x8x128xf32>
    %16 = vector.shape_cast %15 : vector<1x8x128xf32> to vector<8x128xf32>
    %17 = vector.shape_cast %14 : vector<8x128xf32> to vector<1x8x128xf32>
    tpu.vector_store %arg4[%c0_7, %c0_8, %c0_9], %17 {strides = array<i32>} : memref<1x8x128xf32, #tpu.memory_space<vmem>>, vector<1x8x128xf32>,
    %c0_10 = arith.constant 0 : index
    %c0_11 = arith.constant 0 : index
    %c0_12 = arith.constant 0 : index
    %18 = vector.load %arg5[%c0_10, %c0_11, %c0_12] : memref<1x8x128xf32, #tpu.memory_space<vmem>>, vector<1x8x128xf32>
    %19 = vector.shape_cast %18 : vector<1x8x128xf32> to vector<8x128xf32>
    %cst_13 = arith.constant dense<0.000000e+00> : vector<8x128xf32>
    %20 = vector.multi_reduction <add>, %10, %cst_13 [0] : vector<180x8x128xf32> to vector<8x128xf32>
    %21 = arith.addf %19, %20 : vector<8x128xf32>
    %c0_14 = arith.constant 0 : index
    %c0_15 = arith.constant 0 : index
    %c0_16 = arith.constant 0 : index
    %22 = vector.load %arg5[%c0_14, %c0_15, %c0_16] : memref<1x8x128xf32, #tpu.memory_space<vmem>>, vector<1x8x128xf32>
    %23 = vector.shape_cast %22 : vector<1x8x128xf32> to vector<8x128xf32>
    %24 = vector.shape_cast %21 : vector<8x128xf32> to vector<1x8x128xf32>
    tpu.vector_store %arg5[%c0_14, %c0_15, %c0_16], %24 {strides = array<i32>} : memref<1x8x128xf32, #tpu.memory_space<vmem>>, vector<1x8x128xf32>,
    return
  }
  func.func @transform_0(%arg0: i32, %arg1: i32) -> (i32, i32) {
    %c1_i32 = arith.constant 1 : i32
    %0 = arith.muli %arg0, %c1_i32 : i32
    %1 = arith.addi %0, %arg1 : i32
    %c0_i32 = arith.constant 0 : i32
    %c0_i32_0 = arith.constant 0 : i32
    return %1, %c0_i32 : i32, i32
  }
  func.func @transform_1(%arg0: i32, %arg1: i32) -> (i32, i32) {
    %c1_i32 = arith.constant 1 : i32
    %0 = arith.muli %arg0, %c1_i32 : i32
    %1 = arith.addi %0, %arg1 : i32
    %c0_i32 = arith.constant 0 : i32
    %c0_i32_0 = arith.constant 0 : i32
    return %1, %c0_i32 : i32, i32
  }
  func.func @transform_2(%arg0: i32, %arg1: i32) -> (i32, i32, i32) {
    %c0_i32 = arith.constant 0 : i32
    %c0_i32_0 = arith.constant 0 : i32
    %c0_i32_1 = arith.constant 0 : i32
    return %arg0, %c0_i32, %c0_i32_0 : i32, i32, i32
  }
  func.func @transform_3(%arg0: i32, %arg1: i32) -> (i32, i32, i32) {
    %c0_i32 = arith.constant 0 : i32
    %c0_i32_0 = arith.constant 0 : i32
    %c0_i32_1 = arith.constant 0 : i32
    return %arg0, %c0_i32, %c0_i32_0 : i32, i32, i32
  }
}

</mosaic_0001>

<bundles_post_ra>
// kernel: tpu_custom_call.1
= control target key start
LH: loop header
LB: loop body
LE: loop exit
PB: predicated region body
PF: predicated region fallthrough
CT: control target
= control target key end

     0   :  { %9 = vsyncpa [#allocation3], 0  ;;  %s2610_s0 = inlined_call_operand.hbm [shape: bf16[1440,128], index: 0, kind: input, shape index: {}]   ;;  %s2611_s1 = inlined_call_operand.hbm [shape: bf16[1440,128], index: 1, kind: input, shape index: {}]   ;;  %s2612_s2 = inlined_call_operand.hbm [shape: f32[1,8,128], index: 2, kind: output, shape index: {0}]   ;;  %s2613_s3 = inlined_call_operand.hbm [shape: f32[1,8,128], index: 3, kind: output, shape index: {1}]  }
   0x1   :  { %10 = vsyncpa [#allocation6], 0 }
   0x2   :  { %11 = vsyncpa [#allocation4], 0 }
   0x3   :  { %12 = vsyncpa [#allocation9], 0  ;;  %s2536_s12 = smov [#allocation2]   ;;  %s2440_s16 = scalar_lea.hbm %s2610_s0, 11520 }
   0x4   :  { %s22_s13 = sshll.u32 %s2536_s12, 4  ;;  %p2441_p0 = scmp.ne.s32.totalorder %s2610_s0, %s2440_s16  ;;  %s23_s13 = int_to_ptr.vmem [resolvable:$true] %s22_s13 }
   0x5   :  { %p2444_p1 = scmp.lt.u32.totalorder %s2440_s16, %s2610_s0 }
   0x7   :  { %p2446_p2 = pnand %p2444_p1, %p2441_p0 }
   0x9   :  { %2449 = shalt.err (!%p2446_p2)
}
   0xa   :  { %s2450_s21 = scalar_lea.vmem %s23_s13, 11520  ;;  %p2455_p4 = scmp.lt.s32.totalorder %s23_s13, %s23_s13 }
   0xb   :  { %p2451_p3 = scmp.ne.s32.totalorder %s23_s13, %s2450_s21  ;;  %p2456_p5 = scmp.lt.s32.totalorder %s2450_s21, %s2450_s21 }
   0xd   :  { %p2457_p6 = por %p2456_p5, %p2455_p4 }
   0xf   :  { %p2458_p7 = pnand %p2457_p6, %p2451_p3 }
  0x11   :  { %2461 = shalt.err (!%p2458_p7)
}
  0x12   :  { %s2537_s22 = smov 64   ;;  %s2538_s23 = smov 4  }
  0x13   :  { %28 = dma.hbm_to_vmem [thread:$0]  %s2610_s0, 11520, %s23_s13, [#allocation3], %s2537_s22, %s2537_s22, %s2538_s23  }
  0x14   :  { %s2539_s26 = smov [#allocation5]   ;;  %s2462_s30 = scalar_lea.hbm %s2611_s1, 11520 }
  0x15   :  { %s38_s27 = sshll.u32 %s2539_s26, 4  ;;  %p2463_p8 = scmp.ne.s32.totalorder %s2611_s1, %s2462_s30  ;;  %s39_s27 = int_to_ptr.vmem [resolvable:$true] %s38_s27 }
  0x16   :  { %p2466_p9 = scmp.lt.u32.totalorder %s2462_s30, %s2611_s1 }
  0x18   :  { %p2468_p10 = pnand %p2466_p9, %p2463_p8 }
  0x1a   :  { %2471 = shalt.err (!%p2468_p10)
}
  0x1b   :  { %s2472_s8 = scalar_lea.vmem %s39_s27, 11520  ;;  %p2477_p12 = scmp.lt.s32.totalorder %s39_s27, %s39_s27 }
  0x1c   :  { %p2473_p11 = scmp.ne.s32.totalorder %s39_s27, %s2472_s8  ;;  %p2478_p13 = scmp.lt.s32.totalorder %s2472_s8, %s2472_s8 }
  0x1e   :  { %p2479_p0 = por %p2478_p13, %p2477_p12 }
  0x20   :  { %p2480_p1 = pnand %p2479_p0, %p2473_p11 }
  0x22   :  { %2483 = shalt.err (!%p2480_p1)
}
  0x23   :  { %44 = dma.hbm_to_vmem [thread:$0]  %s2611_s1, 11520, %s39_s27, [#allocation6], %s2537_s22, %s2537_s22, %s2538_s23  }
  0x24   :  { %2528 = dma.done.wait [#allocation3], 11520  }
  0x25   :  { %2529 = vsyncadd [#allocation3], 4294955776 }
  0x26   :  { %2530 = dma.done.wait [#allocation6], 11520  }
  0x27   :  { %2531 = vsyncadd [#allocation6], 4294955776  ;;  %v1536_v0 = vld [vmem:[#allocation2] sm:$0xff]   ;;  %v1896_v1 = vld [vmem:[#allocation5] sm:$0xff]   ;;  %s2540_s1 = smov [#allocation7]   ;;  %s2541_s11 = smov [#allocation8]  }
  0x28   :  { %v2255_v2 = vld [vmem:[#allocation2 + $0x8] sm:$0xff]   ;;  %v2344_v3 = vld [vmem:[#allocation5 + $0x8] sm:$0xff]   ;;  %v1537_v4 = vunpack.c.l.bf16 %v1536_v0  ;;  %v1538_v5 = vunpack.c.h.bf16 %v1536_v0  ;;  %v1897_v6 = vunpack.c.l.bf16 %v1896_v1  ;;  %v1898_v7 = vunpack.c.h.bf16 %v1896_v1  ;;  %v2256_v11 = vld [vmem:[#allocation2 + $0x10] sm:$0xff]   ;;  %s1511_s10 = sshll.u32 %s2540_s1, 4  ;;  %s1521_s12 = sshll.u32 %s2541_s11, 4  ;;  %s1512_s10 = int_to_ptr.vmem [resolvable:$true] %s1511_s10  ;;  %s1522_s12 = int_to_ptr.vmem [resolvable:$true] %s1521_s12 }
  0x29   :  { %v1541_v8 = vunpack.c.l.bf16 %v2255_v2  ;;  %v1901_v9 = vunpack.c.l.bf16 %v2344_v3  ;;  %v1542_v10 = vunpack.c.h.bf16 %v2255_v2  ;;  %v1902_v12 = vunpack.c.h.bf16 %v2344_v3  ;;  %v2345_v13 = vld [vmem:[#allocation5 + $0x10] sm:$0xff]   ;;  %v2257_v19 = vld [vmem:[#allocation2 + $0x18] sm:$0xff]   ;;  %v2346_v21 = vld [vmem:[#allocation5 + $0x18] sm:$0xff]   ;;  %s2484_s13 = scalar_lea.vmem %s1512_s10, 128  ;;  %p2489_p3 = scmp.lt.s32.totalorder %s1512_s10, %s1512_s10 }
  0x2a   :  { %v781_v14 = vmul.f32 %v1897_v6, %v1537_v4  ;;  %v782_v15 = vmul.f32 %v1898_v7, %v1538_v5  ;;  %v961_v16 = vadd.f32 %v1897_v6, %v1537_v4  ;;  %v962_v17 = vadd.f32 %v1898_v7, %v1538_v5  ;;  %v2258_v32 = vld [vmem:[#allocation2 + $0x20] sm:$0xff]   ;;  %v2347_v33 = vld [vmem:[#allocation5 + $0x20] sm:$0xff]   ;;  %v2259_v46 = vld [vmem:[#allocation2 + $0x28] sm:$0xff]   ;;  %p2485_p2 = scmp.ne.s32.totalorder %s1512_s10, %s2484_s13  ;;  %p2490_p4 = scmp.lt.s32.totalorder %s2484_s13, %s2484_s13 }
  0x2b   :  { %v1545_v18 = vunpack.c.l.bf16 %v2256_v11  ;;  %v1905_v20 = vunpack.c.l.bf16 %v2345_v13  ;;  %v783_v22 = vmul.f32 %v1901_v9, %v1541_v8  ;;  %v963_v23 = vadd.f32 %v1901_v9, %v1541_v8  ;;  %v2348_v47 = vld [vmem:[#allocation5 + $0x28] sm:$0xff]   ;;  %v2260_v60 = vld [vmem:[#allocation2 + $0x30] sm:$0xff]   ;;  %v2349_v61 = vld [vmem:[#allocation5 + $0x30] sm:$0xff]  }
  0x2c   :  { %v1546_v24 = vunpack.c.h.bf16 %v2256_v11  ;;  %v1906_v25 = vunpack.c.h.bf16 %v2345_v13  ;;  %v784_v26 = vmul.f32 %v1902_v12, %v1542_v10  ;;  %v964_v27 = vadd.f32 %v1902_v12, %v1542_v10  ;;  %v2261_v10 = vld [vmem:[#allocation2 + $0x38] sm:$0xff]   ;;  %v2350_v11 = vld [vmem:[#allocation5 + $0x38] sm:$0xff]   ;;  %p2491_p5 = por %p2490_p4, %p2489_p3 }
  0x2d   :  { %v1142_v28 = vadd.f32 %v782_v15, %v781_v14  ;;  %v1324_v29 = vadd.f32 %v962_v17, %v961_v16  ;;  %v1549_v30 = vunpack.c.l.bf16 %v2257_v19  ;;  %v1909_v31 = vunpack.c.l.bf16 %v2346_v21 }
  0x2e   :  { %v785_v34 = vmul.f32 %v1905_v20, %v1545_v18  ;;  %v965_v35 = vadd.f32 %v1905_v20, %v1545_v18  ;;  %v1550_v38 = vunpack.c.h.bf16 %v2257_v19  ;;  %v1910_v39 = vunpack.c.h.bf16 %v2346_v21  ;;  %p2492_p6 = pnand %p2491_p5, %p2485_p2 }
  0x2f   :  { %v1143_v36 = vadd.f32 %v1142_v28, %v783_v22  ;;  %v1325_v37 = vadd.f32 %v1324_v29, %v963_v23  ;;  %v786_v40 = vmul.f32 %v1906_v25, %v1546_v24  ;;  %v966_v41 = vadd.f32 %v1906_v25, %v1546_v24  ;;  %v2262_v24 = vld [vmem:[#allocation2 + $0x40] sm:$0xff]   ;;  %v2351_v25 = vld [vmem:[#allocation5 + $0x40] sm:$0xff]  }
  0x30   :  { %v1553_v44 = vunpack.c.l.bf16 %v2258_v32  ;;  %v1913_v45 = vunpack.c.l.bf16 %v2347_v33  ;;  %v787_v48 = vmul.f32 %v1909_v31, %v1549_v30  ;;  %v967_v49 = vadd.f32 %v1909_v31, %v1549_v30 }
  0x31   :  { %v1144_v42 = vadd.f32 %v1143_v36, %v784_v26  ;;  %v1326_v43 = vadd.f32 %v1325_v37, %v964_v27  ;;  %v1554_v52 = vunpack.c.h.bf16 %v2258_v32  ;;  %v1914_v53 = vunpack.c.h.bf16 %v2347_v33 }
  0x32   :  { %v788_v54 = vmul.f32 %v1910_v39, %v1550_v38  ;;  %v968_v55 = vadd.f32 %v1910_v39, %v1550_v38  ;;  %v1557_v58 = vunpack.c.l.bf16 %v2259_v46  ;;  %v1917_v59 = vunpack.c.l.bf16 %v2348_v47  ;;  %v2263_v38 = vld [vmem:[#allocation2 + $0x48] sm:$0xff]   ;;  %v2352_v39 = vld [vmem:[#allocation5 + $0x48] sm:$0xff]  }
  0x33   :  { %v1145_v50 = vadd.f32 %v1144_v42, %v785_v34  ;;  %v1327_v51 = vadd.f32 %v1326_v43, %v965_v35  ;;  %v789_v62 = vmul.f32 %v1913_v45, %v1553_v44  ;;  %v969_v63 = vadd.f32 %v1913_v45, %v1553_v44 }
  0x34   :  { %v1558_v2 = vunpack.c.h.bf16 %v2259_v46  ;;  %v1918_v3 = vunpack.c.h.bf16 %v2348_v47  ;;  %v790_v4 = vmul.f32 %v1914_v53, %v1554_v52  ;;  %v970_v5 = vadd.f32 %v1914_v53, %v1554_v52  ;;  %v2264_v52 = vld [vmem:[#allocation2 + $0x50] sm:$0xff]   ;;  %v2353_v53 = vld [vmem:[#allocation5 + $0x50] sm:$0xff]  }
  0x35   :  { %v1146_v56 = vadd.f32 %v1145_v50, %v786_v40  ;;  %v1328_v57 = vadd.f32 %v1327_v51, %v966_v41  ;;  %v1561_v8 = vunpack.c.l.bf16 %v2260_v60  ;;  %v1921_v9 = vunpack.c.l.bf16 %v2349_v61 }
  0x36   :  { %v791_v12 = vmul.f32 %v1917_v59, %v1557_v58  ;;  %v971_v13 = vadd.f32 %v1917_v59, %v1557_v58  ;;  %v1562_v16 = vunpack.c.h.bf16 %v2260_v60  ;;  %v1922_v17 = vunpack.c.h.bf16 %v2349_v61 }
  0x37   :  { %v1147_v0 = vadd.f32 %v1146_v56, %v787_v48  ;;  %v1329_v1 = vadd.f32 %v1328_v57, %v967_v49  ;;  %v792_v18 = vmul.f32 %v1918_v3, %v1558_v2  ;;  %v972_v19 = vadd.f32 %v1918_v3, %v1558_v2  ;;  %v2265_v2 = vld [vmem:[#allocation2 + $0x58] sm:$0xff]   ;;  %v2354_v3 = vld [vmem:[#allocation5 + $0x58] sm:$0xff]  }
  0x38   :  { %v1565_v22 = vunpack.c.l.bf16 %v2261_v10  ;;  %v1925_v23 = vunpack.c.l.bf16 %v2350_v11  ;;  %v793_v26 = vmul.f32 %v1921_v9, %v1561_v8  ;;  %v973_v27 = vadd.f32 %v1921_v9, %v1561_v8 }
  0x39   :  { %v1148_v6 = vadd.f32 %v1147_v0, %v788_v54  ;;  %v1330_v7 = vadd.f32 %v1329_v1, %v968_v55  ;;  %v1566_v30 = vunpack.c.h.bf16 %v2261_v10  ;;  %v1926_v31 = vunpack.c.h.bf16 %v2350_v11 }
  0x3a   :  { %v794_v32 = vmul.f32 %v1922_v17, %v1562_v16  ;;  %v974_v33 = vadd.f32 %v1922_v17, %v1562_v16  ;;  %v1569_v36 = vunpack.c.l.bf16 %v2262_v24  ;;  %v1929_v37 = vunpack.c.l.bf16 %v2351_v25  ;;  %v2266_v16 = vld [vmem:[#allocation2 + $0x60] sm:$0xff]   ;;  %v2355_v17 = vld [vmem:[#allocation5 + $0x60] sm:$0xff]  }
  0x3b   :  { %v1149_v14 = vadd.f32 %v1148_v6, %v789_v62  ;;  %v1331_v15 = vadd.f32 %v1330_v7, %v969_v63  ;;  %v795_v40 = vmul.f32 %v1925_v23, %v1565_v22  ;;  %v975_v41 = vadd.f32 %v1925_v23, %v1565_v22 }
  0x3c   :  { %v1570_v44 = vunpack.c.h.bf16 %v2262_v24  ;;  %v1930_v45 = vunpack.c.h.bf16 %v2351_v25  ;;  %v796_v46 = vmul.f32 %v1926_v31, %v1566_v30  ;;  %v976_v47 = vadd.f32 %v1926_v31, %v1566_v30  ;;  %v2267_v30 = vld [vmem:[#allocation2 + $0x68] sm:$0xff]   ;;  %v2356_v31 = vld [vmem:[#allocation5 + $0x68] sm:$0xff]  }
  0x3d   :  { %v1150_v20 = vadd.f32 %v1149_v14, %v790_v4  ;;  %v1332_v21 = vadd.f32 %v1331_v15, %v970_v5  ;;  %v1573_v50 = vunpack.c.l.bf16 %v2263_v38  ;;  %v1933_v51 = vunpack.c.l.bf16 %v2352_v39 }
  0x3e   :  { %v797_v54 = vmul.f32 %v1929_v37, %v1569_v36  ;;  %v977_v55 = vadd.f32 %v1929_v37, %v1569_v36  ;;  %v1574_v58 = vunpack.c.h.bf16 %v2263_v38  ;;  %v1934_v59 = vunpack.c.h.bf16 %v2352_v39 }
  0x3f   :  { %v1151_v28 = vadd.f32 %v1150_v20, %v791_v12  ;;  %v1333_v29 = vadd.f32 %v1332_v21, %v971_v13  ;;  %v798_v60 = vmul.f32 %v1930_v45, %v1570_v44  ;;  %v978_v61 = vadd.f32 %v1930_v45, %v1570_v44  ;;  %v2268_v44 = vld [vmem:[#allocation2 + $0x70] sm:$0xff]   ;;  %v2357_v45 = vld [vmem:[#allocation5 + $0x70] sm:$0xff]  }
  0x40   :  { %v1577_v0 = vunpack.c.l.bf16 %v2264_v52  ;;  %v1937_v1 = vunpack.c.l.bf16 %v2353_v53  ;;  %v799_v4 = vmul.f32 %v1933_v51, %v1573_v50  ;;  %v979_v5 = vadd.f32 %v1933_v51, %v1573_v50 }
  0x41   :  { %v1152_v34 = vadd.f32 %v1151_v28, %v792_v18  ;;  %v1334_v35 = vadd.f32 %v1333_v29, %v972_v19  ;;  %v1578_v8 = vunpack.c.h.bf16 %v2264_v52  ;;  %v1938_v9 = vunpack.c.h.bf16 %v2353_v53 }
  0x42   :  { %v800_v10 = vmul.f32 %v1934_v59, %v1574_v58  ;;  %v980_v11 = vadd.f32 %v1934_v59, %v1574_v58  ;;  %v1581_v14 = vunpack.c.l.bf16 %v2265_v2  ;;  %v1941_v15 = vunpack.c.l.bf16 %v2354_v3  ;;  %v2269_v58 = vld [vmem:[#allocation2 + $0x78] sm:$0xff]   ;;  %v2358_v59 = vld [vmem:[#allocation5 + $0x78] sm:$0xff]  }
  0x43   :  { %v1153_v42 = vadd.f32 %v1152_v34, %v793_v26  ;;  %v1335_v43 = vadd.f32 %v1334_v35, %v973_v27  ;;  %v801_v18 = vmul.f32 %v1937_v1, %v1577_v0  ;;  %v981_v19 = vadd.f32 %v1937_v1, %v1577_v0 }
  0x44   :  { %v1582_v22 = vunpack.c.h.bf16 %v2265_v2  ;;  %v1942_v23 = vunpack.c.h.bf16 %v2354_v3  ;;  %v802_v24 = vmul.f32 %v1938_v9, %v1578_v8  ;;  %v982_v25 = vadd.f32 %v1938_v9, %v1578_v8  ;;  %v2270_v8 = vld [vmem:[#allocation2 + $0x80] sm:$0xff]   ;;  %v2359_v9 = vld [vmem:[#allocation5 + $0x80] sm:$0xff]  }
  0x45   :  { %v1154_v48 = vadd.f32 %v1153_v42, %v794_v32  ;;  %v1336_v49 = vadd.f32 %v1335_v43, %v974_v33  ;;  %v1585_v28 = vunpack.c.l.bf16 %v2266_v16  ;;  %v1945_v29 = vunpack.c.l.bf16 %v2355_v17 }
  0x46   :  { %v803_v32 = vmul.f32 %v1941_v15, %v1581_v14  ;;  %v983_v33 = vadd.f32 %v1941_v15, %v1581_v14  ;;  %v1586_v36 = vunpack.c.h.bf16 %v2266_v16  ;;  %v1946_v37 = vunpack.c.h.bf16 %v2355_v17 }
  0x47   :  { %v1155_v56 = vadd.f32 %v1154_v48, %v795_v40  ;;  %v1337_v57 = vadd.f32 %v1336_v49, %v975_v41  ;;  %v804_v38 = vmul.f32 %v1942_v23, %v1582_v22  ;;  %v984_v39 = vadd.f32 %v1942_v23, %v1582_v22  ;;  %v2271_v22 = vld [vmem:[#allocation2 + $0x88] sm:$0xff]   ;;  %v2360_v23 = vld [vmem:[#allocation5 + $0x88] sm:$0xff]  }
  0x48   :  { %v1589_v42 = vunpack.c.l.bf16 %v2267_v30  ;;  %v1949_v43 = vunpack.c.l.bf16 %v2356_v31  ;;  %v1590_v50 = vunpack.c.h.bf16 %v2267_v30  ;;  %v1950_v51 = vunpack.c.h.bf16 %v2356_v31 }
  0x49   :  { %v1156_v62 = vadd.f32 %v1155_v56, %v796_v46  ;;  %v1338_v63 = vadd.f32 %v1337_v57, %v976_v47  ;;  %v805_v46 = vmul.f32 %v1945_v29, %v1585_v28  ;;  %v985_v47 = vadd.f32 %v1945_v29, %v1585_v28 }
  0x4a   :  { %v806_v52 = vmul.f32 %v1946_v37, %v1586_v36  ;;  %v986_v53 = vadd.f32 %v1946_v37, %v1586_v36  ;;  %v1593_v56 = vunpack.c.l.bf16 %v2268_v44  ;;  %v1953_v57 = vunpack.c.l.bf16 %v2357_v45  ;;  %v2272_v36 = vld [vmem:[#allocation2 + $0x90] sm:$0xff]   ;;  %v2361_v37 = vld [vmem:[#allocation5 + $0x90] sm:$0xff]  }
  0x4b   :  { %v1157_v6 = vadd.f32 %v1156_v62, %v797_v54  ;;  %v1339_v7 = vadd.f32 %v1338_v63, %v977_v55  ;;  %v1594_v0 = vunpack.c.h.bf16 %v2268_v44  ;;  %v1954_v1 = vunpack.c.h.bf16 %v2357_v45 }
  0x4c   :  { %v808_v2 = vmul.f32 %v1950_v51, %v1590_v50  ;;  %v988_v3 = vadd.f32 %v1950_v51, %v1590_v50  ;;  %v1598_v14 = vunpack.c.h.bf16 %v2269_v58  ;;  %v1958_v15 = vunpack.c.h.bf16 %v2358_v59  ;;  %v2273_v50 = vld [vmem:[#allocation2 + $0x98] sm:$0xff]   ;;  %v2362_v51 = vld [vmem:[#allocation5 + $0x98] sm:$0xff]  }
  0x4d   :  { %v1158_v12 = vadd.f32 %v1157_v6, %v798_v60  ;;  %v1340_v13 = vadd.f32 %v1339_v7, %v978_v61  ;;  %v807_v60 = vmul.f32 %v1949_v43, %v1589_v42  ;;  %v987_v61 = vadd.f32 %v1949_v43, %v1589_v42 }
  0x4e   :  { %v1597_v6 = vunpack.c.l.bf16 %v2269_v58  ;;  %v1957_v7 = vunpack.c.l.bf16 %v2358_v59  ;;  %v810_v16 = vmul.f32 %v1954_v1, %v1594_v0  ;;  %v990_v17 = vadd.f32 %v1954_v1, %v1594_v0  ;;  %v2274_v0 = vld [vmem:[#allocation2 + $0xa0] sm:$0xff]   ;;  %v2363_v1 = vld [vmem:[#allocation5 + $0xa0] sm:$0xff]  }
  0x4f   :  { %v1159_v20 = vadd.f32 %v1158_v12, %v799_v4  ;;  %v1341_v21 = vadd.f32 %v1340_v13, %v979_v5  ;;  %v1602_v28 = vunpack.c.h.bf16 %v2270_v8  ;;  %v1962_v29 = vunpack.c.h.bf16 %v2359_v9 }
  0x50   :  { %v812_v30 = vmul.f32 %v1958_v15, %v1598_v14  ;;  %v992_v31 = vadd.f32 %v1958_v15, %v1598_v14  ;;  %v1606_v42 = vunpack.c.h.bf16 %v2271_v22  ;;  %v1966_v43 = vunpack.c.h.bf16 %v2360_v23  ;;  %v2275_v14 = vld [vmem:[#allocation2 + $0xa8] sm:$0xff]   ;;  %v2364_v15 = vld [vmem:[#allocation5 + $0xa8] sm:$0xff]  }
  0x51   :  { %v1160_v26 = vadd.f32 %v1159_v20, %v800_v10  ;;  %v1342_v27 = vadd.f32 %v1341_v21, %v980_v11  ;;  %v809_v10 = vmul.f32 %v1953_v57, %v1593_v56  ;;  %v989_v11 = vadd.f32 %v1953_v57, %v1593_v56 }
  0x52   :  { %v1601_v20 = vunpack.c.l.bf16 %v2270_v8  ;;  %v1961_v21 = vunpack.c.l.bf16 %v2359_v9  ;;  %v814_v44 = vmul.f32 %v1962_v29, %v1602_v28  ;;  %v994_v45 = vadd.f32 %v1962_v29, %v1602_v28  ;;  %v2276_v28 = vld [vmem:[#allocation2 + $0xb0] sm:$0xff]   ;;  %v2365_v29 = vld [vmem:[#allocation5 + $0xb0] sm:$0xff]  }
  0x53   :  { %v1161_v34 = vadd.f32 %v1160_v26, %v801_v18  ;;  %v1343_v35 = vadd.f32 %v1342_v27, %v981_v19  ;;  %v1610_v56 = vunpack.c.h.bf16 %v2272_v36  ;;  %v1970_v57 = vunpack.c.h.bf16 %v2361_v37 }
  0x54   :  { %v816_v58 = vmul.f32 %v1966_v43, %v1606_v42  ;;  %v996_v59 = vadd.f32 %v1966_v43, %v1606_v42  ;;  %v2277_v42 = vld [vmem:[#allocation2 + $0xb8] sm:$0xff]   ;;  %v2366_v43 = vld [vmem:[#allocation5 + $0xb8] sm:$0xff]  }
  0x55   :  { %v1162_v40 = vadd.f32 %v1161_v34, %v802_v24  ;;  %v1344_v41 = vadd.f32 %v1343_v35, %v982_v25  ;;  %v811_v24 = vmul.f32 %v1957_v7, %v1597_v6  ;;  %v991_v25 = vadd.f32 %v1957_v7, %v1597_v6 }
  0x56   :  { %v1605_v34 = vunpack.c.l.bf16 %v2271_v22  ;;  %v1965_v35 = vunpack.c.l.bf16 %v2360_v23  ;;  %v1614_v6 = vunpack.c.h.bf16 %v2273_v50  ;;  %v1974_v7 = vunpack.c.h.bf16 %v2362_v51 }
  0x57   :  { %v1163_v48 = vadd.f32 %v1162_v40, %v803_v32  ;;  %v1345_v49 = vadd.f32 %v1344_v41, %v983_v33  ;;  %v818_v8 = vmul.f32 %v1970_v57, %v1610_v56  ;;  %v998_v9 = vadd.f32 %v1970_v57, %v1610_v56  ;;  %v2278_v56 = vld [vmem:[#allocation2 + $0xc0] sm:$0xff]   ;;  %v2367_v57 = vld [vmem:[#allocation5 + $0xc0] sm:$0xff]  }
  0x58   :  { %v820_v22 = vmul.f32 %v1974_v7, %v1614_v6  ;;  %v1000_v23 = vadd.f32 %v1974_v7, %v1614_v6  ;;  %v2279_v6 = vld [vmem:[#allocation2 + $0xc8] sm:$0xff]   ;;  %v2368_v7 = vld [vmem:[#allocation5 + $0xc8] sm:$0xff]  }
  0x59   :  { %v1164_v54 = vadd.f32 %v1163_v48, %v804_v38  ;;  %v1346_v55 = vadd.f32 %v1345_v49, %v984_v39  ;;  %v813_v38 = vmul.f32 %v1961_v21, %v1601_v20  ;;  %v993_v39 = vadd.f32 %v1961_v21, %v1601_v20 }
  0x5a   :  { %v1609_v48 = vunpack.c.l.bf16 %v2272_v36  ;;  %v1969_v49 = vunpack.c.l.bf16 %v2361_v37  ;;  %v1618_v20 = vunpack.c.h.bf16 %v2274_v0  ;;  %v1978_v21 = vunpack.c.h.bf16 %v2363_v1 }
  0x5b   :  { %v1165_v62 = vadd.f32 %v1164_v54, %v805_v46  ;;  %v1347_v63 = vadd.f32 %v1346_v55, %v985_v47 }
  0x5c   :  { %v822_v36 = vmul.f32 %v1978_v21, %v1618_v20  ;;  %v1002_v37 = vadd.f32 %v1978_v21, %v1618_v20  ;;  %v2280_v20 = vld [vmem:[#allocation2 + $0xd0] sm:$0xff]   ;;  %v2369_v21 = vld [vmem:[#allocation5 + $0xd0] sm:$0xff]  }
  0x5d   :  { %v1166_v4 = vadd.f32 %v1165_v62, %v806_v52  ;;  %v1348_v5 = vadd.f32 %v1347_v63, %v986_v53  ;;  %v815_v52 = vmul.f32 %v1965_v35, %v1605_v34  ;;  %v995_v53 = vadd.f32 %v1965_v35, %v1605_v34 }
  0x5e   :  { %v1613_v62 = vunpack.c.l.bf16 %v2273_v50  ;;  %v1973_v63 = vunpack.c.l.bf16 %v2362_v51  ;;  %v1622_v34 = vunpack.c.h.bf16 %v2275_v14  ;;  %v1982_v35 = vunpack.c.h.bf16 %v2364_v15 }
  0x5f   :  { %v1167_v12 = vadd.f32 %v1166_v4, %v807_v60  ;;  %v1349_v13 = vadd.f32 %v1348_v5, %v987_v61 }
  0x60   :  { %v824_v50 = vmul.f32 %v1982_v35, %v1622_v34  ;;  %v1004_v51 = vadd.f32 %v1982_v35, %v1622_v34  ;;  %v2281_v34 = vld [vmem:[#allocation2 + $0xd8] sm:$0xff]   ;;  %v2370_v35 = vld [vmem:[#allocation5 + $0xd8] sm:$0xff]  }
  0x61   :  { %v1168_v18 = vadd.f32 %v1167_v12, %v808_v2  ;;  %v1350_v19 = vadd.f32 %v1349_v13, %v988_v3  ;;  %v817_v2 = vmul.f32 %v1969_v49, %v1609_v48  ;;  %v997_v3 = vadd.f32 %v1969_v49, %v1609_v48 }
  0x62   :  { %v1617_v12 = vunpack.c.l.bf16 %v2274_v0  ;;  %v1977_v13 = vunpack.c.l.bf16 %v2363_v1  ;;  %v1626_v48 = vunpack.c.h.bf16 %v2276_v28  ;;  %v1986_v49 = vunpack.c.h.bf16 %v2365_v29 }
  0x63   :  { %v1169_v26 = vadd.f32 %v1168_v18, %v809_v10  ;;  %v1351_v27 = vadd.f32 %v1350_v19, %v989_v11 }
  0x64   :  { %v826_v0 = vmul.f32 %v1986_v49, %v1626_v48  ;;  %v1006_v1 = vadd.f32 %v1986_v49, %v1626_v48  ;;  %v2282_v48 = vld [vmem:[#allocation2 + $0xe0] sm:$0xff]   ;;  %v2371_v49 = vld [vmem:[#allocation5 + $0xe0] sm:$0xff]  }
  0x65   :  { %v1170_v32 = vadd.f32 %v1169_v26, %v810_v16  ;;  %v1352_v33 = vadd.f32 %v1351_v27, %v990_v17  ;;  %v819_v16 = vmul.f32 %v1973_v63, %v1613_v62  ;;  %v999_v17 = vadd.f32 %v1973_v63, %v1613_v62 }
  0x66   :  { %v1621_v26 = vunpack.c.l.bf16 %v2275_v14  ;;  %v1981_v27 = vunpack.c.l.bf16 %v2364_v15  ;;  %v1630_v62 = vunpack.c.h.bf16 %v2277_v42  ;;  %v1990_v63 = vunpack.c.h.bf16 %v2366_v43 }
  0x67   :  { %v1171_v40 = vadd.f32 %v1170_v32, %v811_v24  ;;  %v1353_v41 = vadd.f32 %v1352_v33, %v991_v25 }
  0x68   :  { %v828_v14 = vmul.f32 %v1990_v63, %v1630_v62  ;;  %v1008_v15 = vadd.f32 %v1990_v63, %v1630_v62  ;;  %v2283_v62 = vld [vmem:[#allocation2 + $0xe8] sm:$0xff]   ;;  %v2372_v63 = vld [vmem:[#allocation5 + $0xe8] sm:$0xff]  }
  0x69   :  { %v1172_v46 = vadd.f32 %v1171_v40, %v812_v30  ;;  %v1354_v47 = vadd.f32 %v1353_v41, %v992_v31  ;;  %v821_v30 = vmul.f32 %v1977_v13, %v1617_v12  ;;  %v1001_v31 = vadd.f32 %v1977_v13, %v1617_v12 }
  0x6a   :  { %v1625_v40 = vunpack.c.l.bf16 %v2276_v28  ;;  %v1985_v41 = vunpack.c.l.bf16 %v2365_v29  ;;  %v1634_v12 = vunpack.c.h.bf16 %v2278_v56  ;;  %v1994_v13 = vunpack.c.h.bf16 %v2367_v57 }
  0x6b   :  { %v1173_v54 = vadd.f32 %v1172_v46, %v813_v38  ;;  %v1355_v55 = vadd.f32 %v1354_v47, %v993_v39 }
  0x6c   :  { %v830_v28 = vmul.f32 %v1994_v13, %v1634_v12  ;;  %v1010_v29 = vadd.f32 %v1994_v13, %v1634_v12  ;;  %v2284_v12 = vld [vmem:[#allocation2 + $0xf0] sm:$0xff]   ;;  %v2373_v13 = vld [vmem:[#allocation5 + $0xf0] sm:$0xff]  }
  0x6d   :  { %v1174_v60 = vadd.f32 %v1173_v54, %v814_v44  ;;  %v1356_v61 = vadd.f32 %v1355_v55, %v994_v45  ;;  %v823_v44 = vmul.f32 %v1981_v27, %v1621_v26  ;;  %v1003_v45 = vadd.f32 %v1981_v27, %v1621_v26 }
  0x6e   :  { %v1629_v54 = vunpack.c.l.bf16 %v2277_v42  ;;  %v1989_v55 = vunpack.c.l.bf16 %v2366_v43  ;;  %v1638_v26 = vunpack.c.h.bf16 %v2279_v6  ;;  %v1998_v27 = vunpack.c.h.bf16 %v2368_v7 }
  0x6f   :  { %v1175_v4 = vadd.f32 %v1174_v60, %v815_v52  ;;  %v1357_v5 = vadd.f32 %v1356_v61, %v995_v53 }
  0x70   :  { %v832_v42 = vmul.f32 %v1998_v27, %v1638_v26  ;;  %v1012_v43 = vadd.f32 %v1998_v27, %v1638_v26  ;;  %v2285_v26 = vld [vmem:[#allocation2 + $0xf8] sm:$0xff]   ;;  %v2374_v27 = vld [vmem:[#allocation5 + $0xf8] sm:$0xff]  }
  0x71   :  { %v1176_v10 = vadd.f32 %v1175_v4, %v816_v58  ;;  %v1358_v11 = vadd.f32 %v1357_v5, %v996_v59  ;;  %v825_v58 = vmul.f32 %v1985_v41, %v1625_v40  ;;  %v1005_v59 = vadd.f32 %v1985_v41, %v1625_v40 }
  0x72   :  { %v1633_v4 = vunpack.c.l.bf16 %v2278_v56  ;;  %v1993_v5 = vunpack.c.l.bf16 %v2367_v57  ;;  %v1642_v40 = vunpack.c.h.bf16 %v2280_v20  ;;  %v2002_v41 = vunpack.c.h.bf16 %v2369_v21 }
  0x73   :  { %v1177_v18 = vadd.f32 %v1176_v10, %v817_v2  ;;  %v1359_v19 = vadd.f32 %v1358_v11, %v997_v3 }
  0x74   :  { %v834_v56 = vmul.f32 %v2002_v41, %v1642_v40  ;;  %v1014_v57 = vadd.f32 %v2002_v41, %v1642_v40  ;;  %v2286_v40 = vld [vmem:[#allocation2 + $0x100] sm:$0xff]   ;;  %v2375_v41 = vld [vmem:[#allocation5 + $0x100] sm:$0xff]  }
  0x75   :  { %v1178_v24 = vadd.f32 %v1177_v18, %v818_v8  ;;  %v1360_v25 = vadd.f32 %v1359_v19, %v998_v9  ;;  %v827_v8 = vmul.f32 %v1989_v55, %v1629_v54  ;;  %v1007_v9 = vadd.f32 %v1989_v55, %v1629_v54 }
  0x76   :  { %v1637_v18 = vunpack.c.l.bf16 %v2279_v6  ;;  %v1997_v19 = vunpack.c.l.bf16 %v2368_v7  ;;  %v1646_v54 = vunpack.c.h.bf16 %v2281_v34  ;;  %v2006_v55 = vunpack.c.h.bf16 %v2370_v35 }
  0x77   :  { %v1179_v32 = vadd.f32 %v1178_v24, %v819_v16  ;;  %v1361_v33 = vadd.f32 %v1360_v25, %v999_v17 }
  0x78   :  { %v836_v6 = vmul.f32 %v2006_v55, %v1646_v54  ;;  %v1016_v7 = vadd.f32 %v2006_v55, %v1646_v54  ;;  %v2287_v54 = vld [vmem:[#allocation2 + $0x108] sm:$0xff]   ;;  %v2376_v55 = vld [vmem:[#allocation5 + $0x108] sm:$0xff]  }
  0x79   :  { %v1180_v38 = vadd.f32 %v1179_v32, %v820_v22  ;;  %v1362_v39 = vadd.f32 %v1361_v33, %v1000_v23  ;;  %v829_v22 = vmul.f32 %v1993_v5, %v1633_v4  ;;  %v1009_v23 = vadd.f32 %v1993_v5, %v1633_v4 }
  0x7a   :  { %v1641_v32 = vunpack.c.l.bf16 %v2280_v20  ;;  %v2001_v33 = vunpack.c.l.bf16 %v2369_v21  ;;  %v1650_v4 = vunpack.c.h.bf16 %v2282_v48  ;;  %v2010_v5 = vunpack.c.h.bf16 %v2371_v49 }
  0x7b   :  { %v1181_v46 = vadd.f32 %v1180_v38, %v821_v30  ;;  %v1363_v47 = vadd.f32 %v1362_v39, %v1001_v31 }
  0x7c   :  { %v838_v20 = vmul.f32 %v2010_v5, %v1650_v4  ;;  %v1018_v21 = vadd.f32 %v2010_v5, %v1650_v4  ;;  %v2288_v4 = vld [vmem:[#allocation2 + $0x110] sm:$0xff]   ;;  %v2377_v5 = vld [vmem:[#allocation5 + $0x110] sm:$0xff]  }
  0x7d   :  { %v1182_v52 = vadd.f32 %v1181_v46, %v822_v36  ;;  %v1364_v53 = vadd.f32 %v1363_v47, %v1002_v37  ;;  %v831_v36 = vmul.f32 %v1997_v19, %v1637_v18  ;;  %v1011_v37 = vadd.f32 %v1997_v19, %v1637_v18 }
  0x7e   :  { %v1645_v46 = vunpack.c.l.bf16 %v2281_v34  ;;  %v2005_v47 = vunpack.c.l.bf16 %v2370_v35  ;;  %v1654_v18 = vunpack.c.h.bf16 %v2283_v62  ;;  %v2014_v19 = vunpack.c.h.bf16 %v2372_v63 }
  0x7f   :  { %v1183_v60 = vadd.f32 %v1182_v52, %v823_v44  ;;  %v1365_v61 = vadd.f32 %v1364_v53, %v1003_v45 }
  0x80   :  { %v840_v34 = vmul.f32 %v2014_v19, %v1654_v18  ;;  %v1020_v35 = vadd.f32 %v2014_v19, %v1654_v18  ;;  %v2289_v18 = vld [vmem:[#allocation2 + $0x118] sm:$0xff]   ;;  %v2378_v19 = vld [vmem:[#allocation5 + $0x118] sm:$0xff]  }
  0x81   :  { %v1184_v2 = vadd.f32 %v1183_v60, %v824_v50  ;;  %v1366_v3 = vadd.f32 %v1365_v61, %v1004_v51  ;;  %v833_v50 = vmul.f32 %v2001_v33, %v1641_v32  ;;  %v1013_v51 = vadd.f32 %v2001_v33, %v1641_v32 }
  0x82   :  { %v1649_v60 = vunpack.c.l.bf16 %v2282_v48  ;;  %v2009_v61 = vunpack.c.l.bf16 %v2371_v49  ;;  %v1658_v32 = vunpack.c.h.bf16 %v2284_v12  ;;  %v2018_v33 = vunpack.c.h.bf16 %v2373_v13 }
  0x83   :  { %v1185_v10 = vadd.f32 %v1184_v2, %v825_v58  ;;  %v1367_v11 = vadd.f32 %v1366_v3, %v1005_v59 }
  0x84   :  { %v842_v48 = vmul.f32 %v2018_v33, %v1658_v32  ;;  %v1022_v49 = vadd.f32 %v2018_v33, %v1658_v32  ;;  %v2290_v32 = vld [vmem:[#allocation2 + $0x120] sm:$0xff]   ;;  %v2379_v33 = vld [vmem:[#allocation5 + $0x120] sm:$0xff]  }
  0x85   :  { %v1186_v16 = vadd.f32 %v1185_v10, %v826_v0  ;;  %v1368_v17 = vadd.f32 %v1367_v11, %v1006_v1  ;;  %v835_v0 = vmul.f32 %v2005_v47, %v1645_v46  ;;  %v1015_v1 = vadd.f32 %v2005_v47, %v1645_v46 }
  0x86   :  { %v1653_v10 = vunpack.c.l.bf16 %v2283_v62  ;;  %v2013_v11 = vunpack.c.l.bf16 %v2372_v63  ;;  %v1662_v46 = vunpack.c.h.bf16 %v2285_v26  ;;  %v2022_v47 = vunpack.c.h.bf16 %v2374_v27 }
  0x87   :  { %v1187_v24 = vadd.f32 %v1186_v16, %v827_v8  ;;  %v1369_v25 = vadd.f32 %v1368_v17, %v1007_v9 }
  0x88   :  { %v844_v62 = vmul.f32 %v2022_v47, %v1662_v46  ;;  %v1024_v63 = vadd.f32 %v2022_v47, %v1662_v46  ;;  %v2291_v46 = vld [vmem:[#allocation2 + $0x128] sm:$0xff]   ;;  %v2380_v47 = vld [vmem:[#allocation5 + $0x128] sm:$0xff]  }
  0x89   :  { %v1188_v30 = vadd.f32 %v1187_v24, %v828_v14  ;;  %v1370_v31 = vadd.f32 %v1369_v25, %v1008_v15  ;;  %v837_v14 = vmul.f32 %v2009_v61, %v1649_v60  ;;  %v1017_v15 = vadd.f32 %v2009_v61, %v1649_v60 }
  0x8a   :  { %v1657_v24 = vunpack.c.l.bf16 %v2284_v12  ;;  %v2017_v25 = vunpack.c.l.bf16 %v2373_v13  ;;  %v1666_v60 = vunpack.c.h.bf16 %v2286_v40  ;;  %v2026_v61 = vunpack.c.h.bf16 %v2375_v41 }
  0x8b   :  { %v1189_v38 = vadd.f32 %v1188_v30, %v829_v22  ;;  %v1371_v39 = vadd.f32 %v1370_v31, %v1009_v23 }
  0x8c   :  { %v846_v12 = vmul.f32 %v2026_v61, %v1666_v60  ;;  %v1026_v13 = vadd.f32 %v2026_v61, %v1666_v60  ;;  %v2292_v60 = vld [vmem:[#allocation2 + $0x130] sm:$0xff]   ;;  %v2381_v61 = vld [vmem:[#allocation5 + $0x130] sm:$0xff]  }
  0x8d   :  { %v1190_v44 = vadd.f32 %v1189_v38, %v830_v28  ;;  %v1372_v45 = vadd.f32 %v1371_v39, %v1010_v29  ;;  %v839_v28 = vmul.f32 %v2013_v11, %v1653_v10  ;;  %v1019_v29 = vadd.f32 %v2013_v11, %v1653_v10 }
  0x8e   :  { %v1661_v38 = vunpack.c.l.bf16 %v2285_v26  ;;  %v2021_v39 = vunpack.c.l.bf16 %v2374_v27  ;;  %v1670_v10 = vunpack.c.h.bf16 %v2287_v54  ;;  %v2030_v11 = vunpack.c.h.bf16 %v2376_v55 }
  0x8f   :  { %v1191_v52 = vadd.f32 %v1190_v44, %v831_v36  ;;  %v1373_v53 = vadd.f32 %v1372_v45, %v1011_v37 }
  0x90   :  { %v848_v26 = vmul.f32 %v2030_v11, %v1670_v10  ;;  %v1028_v27 = vadd.f32 %v2030_v11, %v1670_v10  ;;  %v2293_v10 = vld [vmem:[#allocation2 + $0x138] sm:$0xff]   ;;  %v2382_v11 = vld [vmem:[#allocation5 + $0x138] sm:$0xff]  }
  0x91   :  { %v1192_v58 = vadd.f32 %v1191_v52, %v832_v42  ;;  %v1374_v59 = vadd.f32 %v1373_v53, %v1012_v43  ;;  %v841_v42 = vmul.f32 %v2017_v25, %v1657_v24  ;;  %v1021_v43 = vadd.f32 %v2017_v25, %v1657_v24 }
  0x92   :  { %v1665_v52 = vunpack.c.l.bf16 %v2286_v40  ;;  %v2025_v53 = vunpack.c.l.bf16 %v2375_v41  ;;  %v1674_v24 = vunpack.c.h.bf16 %v2288_v4  ;;  %v2034_v25 = vunpack.c.h.bf16 %v2377_v5 }
  0x93   :  { %v1193_v2 = vadd.f32 %v1192_v58, %v833_v50  ;;  %v1375_v3 = vadd.f32 %v1374_v59, %v1013_v51 }
  0x94   :  { %v850_v40 = vmul.f32 %v2034_v25, %v1674_v24  ;;  %v1030_v41 = vadd.f32 %v2034_v25, %v1674_v24  ;;  %v2294_v24 = vld [vmem:[#allocation2 + $0x140] sm:$0xff]   ;;  %v2383_v25 = vld [vmem:[#allocation5 + $0x140] sm:$0xff]  }
  0x95   :  { %v1194_v8 = vadd.f32 %v1193_v2, %v834_v56  ;;  %v1376_v9 = vadd.f32 %v1375_v3, %v1014_v57  ;;  %v843_v56 = vmul.f32 %v2021_v39, %v1661_v38  ;;  %v1023_v57 = vadd.f32 %v2021_v39, %v1661_v38 }
  0x96   :  { %v1669_v2 = vunpack.c.l.bf16 %v2287_v54  ;;  %v2029_v3 = vunpack.c.l.bf16 %v2376_v55  ;;  %v1678_v38 = vunpack.c.h.bf16 %v2289_v18  ;;  %v2038_v39 = vunpack.c.h.bf16 %v2378_v19 }
  0x97   :  { %v1195_v16 = vadd.f32 %v1194_v8, %v835_v0  ;;  %v1377_v17 = vadd.f32 %v1376_v9, %v1015_v1 }
  0x98   :  { %v852_v54 = vmul.f32 %v2038_v39, %v1678_v38  ;;  %v1032_v55 = vadd.f32 %v2038_v39, %v1678_v38  ;;  %v2295_v38 = vld [vmem:[#allocation2 + $0x148] sm:$0xff]   ;;  %v2384_v39 = vld [vmem:[#allocation5 + $0x148] sm:$0xff]  }
  0x99   :  { %v1196_v22 = vadd.f32 %v1195_v16, %v836_v6  ;;  %v1378_v23 = vadd.f32 %v1377_v17, %v1016_v7  ;;  %v845_v6 = vmul.f32 %v2025_v53, %v1665_v52  ;;  %v1025_v7 = vadd.f32 %v2025_v53, %v1665_v52 }
  0x9a   :  { %v1673_v16 = vunpack.c.l.bf16 %v2288_v4  ;;  %v2033_v17 = vunpack.c.l.bf16 %v2377_v5  ;;  %v1682_v52 = vunpack.c.h.bf16 %v2290_v32  ;;  %v2042_v53 = vunpack.c.h.bf16 %v2379_v33 }
  0x9b   :  { %v1197_v30 = vadd.f32 %v1196_v22, %v837_v14  ;;  %v1379_v31 = vadd.f32 %v1378_v23, %v1017_v15 }
  0x9c   :  { %v854_v4 = vmul.f32 %v2042_v53, %v1682_v52  ;;  %v1034_v5 = vadd.f32 %v2042_v53, %v1682_v52  ;;  %v2296_v52 = vld [vmem:[#allocation2 + $0x150] sm:$0xff]   ;;  %v2385_v53 = vld [vmem:[#allocation5 + $0x150] sm:$0xff]  }
  0x9d   :  { %v1198_v36 = vadd.f32 %v1197_v30, %v838_v20  ;;  %v1380_v37 = vadd.f32 %v1379_v31, %v1018_v21  ;;  %v847_v20 = vmul.f32 %v2029_v3, %v1669_v2  ;;  %v1027_v21 = vadd.f32 %v2029_v3, %v1669_v2 }
  0x9e   :  { %v1677_v30 = vunpack.c.l.bf16 %v2289_v18  ;;  %v2037_v31 = vunpack.c.l.bf16 %v2378_v19  ;;  %v1686_v2 = vunpack.c.h.bf16 %v2291_v46  ;;  %v2046_v3 = vunpack.c.h.bf16 %v2380_v47 }
  0x9f   :  { %v1199_v44 = vadd.f32 %v1198_v36, %v839_v28  ;;  %v1381_v45 = vadd.f32 %v1380_v37, %v1019_v29 }
  0xa0   :  { %v856_v18 = vmul.f32 %v2046_v3, %v1686_v2  ;;  %v1036_v19 = vadd.f32 %v2046_v3, %v1686_v2  ;;  %v2297_v2 = vld [vmem:[#allocation2 + $0x158] sm:$0xff]   ;;  %v2386_v3 = vld [vmem:[#allocation5 + $0x158] sm:$0xff]  }
  0xa1   :  { %v1200_v50 = vadd.f32 %v1199_v44, %v840_v34  ;;  %v1382_v51 = vadd.f32 %v1381_v45, %v1020_v35  ;;  %v849_v34 = vmul.f32 %v2033_v17, %v1673_v16  ;;  %v1029_v35 = vadd.f32 %v2033_v17, %v1673_v16 }
  0xa2   :  { %v1681_v44 = vunpack.c.l.bf16 %v2290_v32  ;;  %v2041_v45 = vunpack.c.l.bf16 %v2379_v33  ;;  %v1690_v16 = vunpack.c.h.bf16 %v2292_v60  ;;  %v2050_v17 = vunpack.c.h.bf16 %v2381_v61 }
  0xa3   :  { %v1201_v58 = vadd.f32 %v1200_v50, %v841_v42  ;;  %v1383_v59 = vadd.f32 %v1382_v51, %v1021_v43 }
  0xa4   :  { %v858_v32 = vmul.f32 %v2050_v17, %v1690_v16  ;;  %v1038_v33 = vadd.f32 %v2050_v17, %v1690_v16  ;;  %v2298_v16 = vld [vmem:[#allocation2 + $0x160] sm:$0xff]   ;;  %v2387_v17 = vld [vmem:[#allocation5 + $0x160] sm:$0xff]  }
  0xa5   :  { %v1202_v0 = vadd.f32 %v1201_v58, %v842_v48  ;;  %v1384_v1 = vadd.f32 %v1383_v59, %v1022_v49  ;;  %v851_v48 = vmul.f32 %v2037_v31, %v1677_v30  ;;  %v1031_v49 = vadd.f32 %v2037_v31, %v1677_v30 }
  0xa6   :  { %v1685_v58 = vunpack.c.l.bf16 %v2291_v46  ;;  %v2045_v59 = vunpack.c.l.bf16 %v2380_v47  ;;  %v1694_v30 = vunpack.c.h.bf16 %v2293_v10  ;;  %v2054_v31 = vunpack.c.h.bf16 %v2382_v11 }
  0xa7   :  { %v1203_v8 = vadd.f32 %v1202_v0, %v843_v56  ;;  %v1385_v9 = vadd.f32 %v1384_v1, %v1023_v57 }
  0xa8   :  { %v860_v46 = vmul.f32 %v2054_v31, %v1694_v30  ;;  %v1040_v47 = vadd.f32 %v2054_v31, %v1694_v30  ;;  %v2299_v30 = vld [vmem:[#allocation2 + $0x168] sm:$0xff]   ;;  %v2388_v31 = vld [vmem:[#allocation5 + $0x168] sm:$0xff]  }
  0xa9   :  { %v1204_v14 = vadd.f32 %v1203_v8, %v844_v62  ;;  %v1386_v15 = vadd.f32 %v1385_v9, %v1024_v63  ;;  %v853_v62 = vmul.f32 %v2041_v45, %v1681_v44  ;;  %v1033_v63 = vadd.f32 %v2041_v45, %v1681_v44 }
  0xaa   :  { %v1689_v8 = vunpack.c.l.bf16 %v2292_v60  ;;  %v2049_v9 = vunpack.c.l.bf16 %v2381_v61  ;;  %v1698_v44 = vunpack.c.h.bf16 %v2294_v24  ;;  %v2058_v45 = vunpack.c.h.bf16 %v2383_v25 }
  0xab   :  { %v1205_v22 = vadd.f32 %v1204_v14, %v845_v6  ;;  %v1387_v23 = vadd.f32 %v1386_v15, %v1025_v7 }
  0xac   :  { %v862_v60 = vmul.f32 %v2058_v45, %v1698_v44  ;;  %v1042_v61 = vadd.f32 %v2058_v45, %v1698_v44  ;;  %v2300_v44 = vld [vmem:[#allocation2 + $0x170] sm:$0xff]   ;;  %v2389_v45 = vld [vmem:[#allocation5 + $0x170] sm:$0xff]  }
  0xad   :  { %v1206_v28 = vadd.f32 %v1205_v22, %v846_v12  ;;  %v1388_v29 = vadd.f32 %v1387_v23, %v1026_v13  ;;  %v855_v12 = vmul.f32 %v2045_v59, %v1685_v58  ;;  %v1035_v13 = vadd.f32 %v2045_v59, %v1685_v58 }
  0xae   :  { %v1693_v22 = vunpack.c.l.bf16 %v2293_v10  ;;  %v2053_v23 = vunpack.c.l.bf16 %v2382_v11  ;;  %v1702_v58 = vunpack.c.h.bf16 %v2295_v38  ;;  %v2062_v59 = vunpack.c.h.bf16 %v2384_v39 }
  0xaf   :  { %v1207_v36 = vadd.f32 %v1206_v28, %v847_v20  ;;  %v1389_v37 = vadd.f32 %v1388_v29, %v1027_v21 }
  0xb0   :  { %v864_v10 = vmul.f32 %v2062_v59, %v1702_v58  ;;  %v1044_v11 = vadd.f32 %v2062_v59, %v1702_v58  ;;  %v2301_v58 = vld [vmem:[#allocation2 + $0x178] sm:$0xff]   ;;  %v2390_v59 = vld [vmem:[#allocation5 + $0x178] sm:$0xff]  }
  0xb1   :  { %v1208_v42 = vadd.f32 %v1207_v36, %v848_v26  ;;  %v1390_v43 = vadd.f32 %v1389_v37, %v1028_v27  ;;  %v857_v26 = vmul.f32 %v2049_v9, %v1689_v8  ;;  %v1037_v27 = vadd.f32 %v2049_v9, %v1689_v8 }
  0xb2   :  { %v1697_v36 = vunpack.c.l.bf16 %v2294_v24  ;;  %v2057_v37 = vunpack.c.l.bf16 %v2383_v25  ;;  %v1706_v8 = vunpack.c.h.bf16 %v2296_v52  ;;  %v2066_v9 = vunpack.c.h.bf16 %v2385_v53 }
  0xb3   :  { %v1209_v50 = vadd.f32 %v1208_v42, %v849_v34  ;;  %v1391_v51 = vadd.f32 %v1390_v43, %v1029_v35 }
  0xb4   :  { %v866_v24 = vmul.f32 %v2066_v9, %v1706_v8  ;;  %v1046_v25 = vadd.f32 %v2066_v9, %v1706_v8  ;;  %v2302_v8 = vld [vmem:[#allocation2 + $0x180] sm:$0xff]   ;;  %v2391_v9 = vld [vmem:[#allocation5 + $0x180] sm:$0xff]  }
  0xb5   :  { %v1210_v56 = vadd.f32 %v1209_v50, %v850_v40  ;;  %v1392_v57 = vadd.f32 %v1391_v51, %v1030_v41  ;;  %v859_v40 = vmul.f32 %v2053_v23, %v1693_v22  ;;  %v1039_v41 = vadd.f32 %v2053_v23, %v1693_v22 }
  0xb6   :  { %v1701_v50 = vunpack.c.l.bf16 %v2295_v38  ;;  %v2061_v51 = vunpack.c.l.bf16 %v2384_v39  ;;  %v1710_v22 = vunpack.c.h.bf16 %v2297_v2  ;;  %v2070_v23 = vunpack.c.h.bf16 %v2386_v3 }
  0xb7   :  { %v1211_v0 = vadd.f32 %v1210_v56, %v851_v48  ;;  %v1393_v1 = vadd.f32 %v1392_v57, %v1031_v49 }
  0xb8   :  { %v868_v38 = vmul.f32 %v2070_v23, %v1710_v22  ;;  %v1048_v39 = vadd.f32 %v2070_v23, %v1710_v22  ;;  %v2303_v22 = vld [vmem:[#allocation2 + $0x188] sm:$0xff]   ;;  %v2392_v23 = vld [vmem:[#allocation5 + $0x188] sm:$0xff]  }
  0xb9   :  { %v1212_v6 = vadd.f32 %v1211_v0, %v852_v54  ;;  %v1394_v7 = vadd.f32 %v1393_v1, %v1032_v55  ;;  %v861_v54 = vmul.f32 %v2057_v37, %v1697_v36  ;;  %v1041_v55 = vadd.f32 %v2057_v37, %v1697_v36 }
  0xba   :  { %v1705_v0 = vunpack.c.l.bf16 %v2296_v52  ;;  %v2065_v1 = vunpack.c.l.bf16 %v2385_v53  ;;  %v1714_v36 = vunpack.c.h.bf16 %v2298_v16  ;;  %v2074_v37 = vunpack.c.h.bf16 %v2387_v17 }
  0xbb   :  { %v1213_v14 = vadd.f32 %v1212_v6, %v853_v62  ;;  %v1395_v15 = vadd.f32 %v1394_v7, %v1033_v63 }
  0xbc   :  { %v870_v52 = vmul.f32 %v2074_v37, %v1714_v36  ;;  %v1050_v53 = vadd.f32 %v2074_v37, %v1714_v36  ;;  %v2304_v36 = vld [vmem:[#allocation2 + $0x190] sm:$0xff]   ;;  %v2393_v37 = vld [vmem:[#allocation5 + $0x190] sm:$0xff]  }
  0xbd   :  { %v1214_v20 = vadd.f32 %v1213_v14, %v854_v4  ;;  %v1396_v21 = vadd.f32 %v1395_v15, %v1034_v5  ;;  %v863_v4 = vmul.f32 %v2061_v51, %v1701_v50  ;;  %v1043_v5 = vadd.f32 %v2061_v51, %v1701_v50 }
  0xbe   :  { %v1709_v14 = vunpack.c.l.bf16 %v2297_v2  ;;  %v2069_v15 = vunpack.c.l.bf16 %v2386_v3  ;;  %v1718_v50 = vunpack.c.h.bf16 %v2299_v30  ;;  %v2078_v51 = vunpack.c.h.bf16 %v2388_v31 }
  0xbf   :  { %v1215_v28 = vadd.f32 %v1214_v20, %v855_v12  ;;  %v1397_v29 = vadd.f32 %v1396_v21, %v1035_v13 }
  0xc0   :  { %v872_v2 = vmul.f32 %v2078_v51, %v1718_v50  ;;  %v1052_v3 = vadd.f32 %v2078_v51, %v1718_v50  ;;  %v2305_v50 = vld [vmem:[#allocation2 + $0x198] sm:$0xff]   ;;  %v2394_v51 = vld [vmem:[#allocation5 + $0x198] sm:$0xff]  }
  0xc1   :  { %v1216_v34 = vadd.f32 %v1215_v28, %v856_v18  ;;  %v1398_v35 = vadd.f32 %v1397_v29, %v1036_v19  ;;  %v865_v18 = vmul.f32 %v2065_v1, %v1705_v0  ;;  %v1045_v19 = vadd.f32 %v2065_v1, %v1705_v0 }
  0xc2   :  { %v1713_v28 = vunpack.c.l.bf16 %v2298_v16  ;;  %v2073_v29 = vunpack.c.l.bf16 %v2387_v17  ;;  %v1722_v0 = vunpack.c.h.bf16 %v2300_v44  ;;  %v2082_v1 = vunpack.c.h.bf16 %v2389_v45 }
  0xc3   :  { %v1217_v42 = vadd.f32 %v1216_v34, %v857_v26  ;;  %v1399_v43 = vadd.f32 %v1398_v35, %v1037_v27 }
  0xc4   :  { %v874_v16 = vmul.f32 %v2082_v1, %v1722_v0  ;;  %v1054_v17 = vadd.f32 %v2082_v1, %v1722_v0  ;;  %v2306_v0 = vld [vmem:[#allocation2 + $0x1a0] sm:$0xff]   ;;  %v2395_v1 = vld [vmem:[#allocation5 + $0x1a0] sm:$0xff]  }
  0xc5   :  { %v1218_v48 = vadd.f32 %v1217_v42, %v858_v32  ;;  %v1400_v49 = vadd.f32 %v1399_v43, %v1038_v33  ;;  %v867_v32 = vmul.f32 %v2069_v15, %v1709_v14  ;;  %v1047_v33 = vadd.f32 %v2069_v15, %v1709_v14 }
  0xc6   :  { %v1717_v42 = vunpack.c.l.bf16 %v2299_v30  ;;  %v2077_v43 = vunpack.c.l.bf16 %v2388_v31  ;;  %v1726_v14 = vunpack.c.h.bf16 %v2301_v58  ;;  %v2086_v15 = vunpack.c.h.bf16 %v2390_v59 }
  0xc7   :  { %v1219_v56 = vadd.f32 %v1218_v48, %v859_v40  ;;  %v1401_v57 = vadd.f32 %v1400_v49, %v1039_v41 }
  0xc8   :  { %v876_v30 = vmul.f32 %v2086_v15, %v1726_v14  ;;  %v1056_v31 = vadd.f32 %v2086_v15, %v1726_v14  ;;  %v2307_v14 = vld [vmem:[#allocation2 + $0x1a8] sm:$0xff]   ;;  %v2396_v15 = vld [vmem:[#allocation5 + $0x1a8] sm:$0xff]  }
  0xc9   :  { %v1220_v62 = vadd.f32 %v1219_v56, %v860_v46  ;;  %v1402_v63 = vadd.f32 %v1401_v57, %v1040_v47  ;;  %v869_v46 = vmul.f32 %v2073_v29, %v1713_v28  ;;  %v1049_v47 = vadd.f32 %v2073_v29, %v1713_v28 }
  0xca   :  { %v1721_v56 = vunpack.c.l.bf16 %v2300_v44  ;;  %v2081_v57 = vunpack.c.l.bf16 %v2389_v45  ;;  %v1730_v28 = vunpack.c.h.bf16 %v2302_v8  ;;  %v2090_v29 = vunpack.c.h.bf16 %v2391_v9 }
  0xcb   :  { %v1221_v6 = vadd.f32 %v1220_v62, %v861_v54  ;;  %v1403_v7 = vadd.f32 %v1402_v63, %v1041_v55 }
  0xcc   :  { %v878_v44 = vmul.f32 %v2090_v29, %v1730_v28  ;;  %v1058_v45 = vadd.f32 %v2090_v29, %v1730_v28  ;;  %v2308_v28 = vld [vmem:[#allocation2 + $0x1b0] sm:$0xff]   ;;  %v2397_v29 = vld [vmem:[#allocation5 + $0x1b0] sm:$0xff]  }
  0xcd   :  { %v1222_v12 = vadd.f32 %v1221_v6, %v862_v60  ;;  %v1404_v13 = vadd.f32 %v1403_v7, %v1042_v61  ;;  %v871_v60 = vmul.f32 %v2077_v43, %v1717_v42  ;;  %v1051_v61 = vadd.f32 %v2077_v43, %v1717_v42 }
  0xce   :  { %v1725_v6 = vunpack.c.l.bf16 %v2301_v58  ;;  %v2085_v7 = vunpack.c.l.bf16 %v2390_v59  ;;  %v1734_v42 = vunpack.c.h.bf16 %v2303_v22  ;;  %v2094_v43 = vunpack.c.h.bf16 %v2392_v23 }
  0xcf   :  { %v1223_v20 = vadd.f32 %v1222_v12, %v863_v4  ;;  %v1405_v21 = vadd.f32 %v1404_v13, %v1043_v5 }
  0xd0   :  { %v880_v58 = vmul.f32 %v2094_v43, %v1734_v42  ;;  %v1060_v59 = vadd.f32 %v2094_v43, %v1734_v42  ;;  %v2309_v42 = vld [vmem:[#allocation2 + $0x1b8] sm:$0xff]   ;;  %v2398_v43 = vld [vmem:[#allocation5 + $0x1b8] sm:$0xff]  }
  0xd1   :  { %v1224_v26 = vadd.f32 %v1223_v20, %v864_v10  ;;  %v1406_v27 = vadd.f32 %v1405_v21, %v1044_v11  ;;  %v873_v10 = vmul.f32 %v2081_v57, %v1721_v56  ;;  %v1053_v11 = vadd.f32 %v2081_v57, %v1721_v56 }
  0xd2   :  { %v1729_v20 = vunpack.c.l.bf16 %v2302_v8  ;;  %v2089_v21 = vunpack.c.l.bf16 %v2391_v9  ;;  %v1738_v56 = vunpack.c.h.bf16 %v2304_v36  ;;  %v2098_v57 = vunpack.c.h.bf16 %v2393_v37 }
  0xd3   :  { %v1225_v34 = vadd.f32 %v1224_v26, %v865_v18  ;;  %v1407_v35 = vadd.f32 %v1406_v27, %v1045_v19 }
  0xd4   :  { %v882_v8 = vmul.f32 %v2098_v57, %v1738_v56  ;;  %v1062_v9 = vadd.f32 %v2098_v57, %v1738_v56  ;;  %v2310_v56 = vld [vmem:[#allocation2 + $0x1c0] sm:$0xff]   ;;  %v2399_v57 = vld [vmem:[#allocation5 + $0x1c0] sm:$0xff]  }
  0xd5   :  { %v1226_v40 = vadd.f32 %v1225_v34, %v866_v24  ;;  %v1408_v41 = vadd.f32 %v1407_v35, %v1046_v25  ;;  %v875_v24 = vmul.f32 %v2085_v7, %v1725_v6  ;;  %v1055_v25 = vadd.f32 %v2085_v7, %v1725_v6 }
  0xd6   :  { %v1733_v34 = vunpack.c.l.bf16 %v2303_v22  ;;  %v2093_v35 = vunpack.c.l.bf16 %v2392_v23  ;;  %v1742_v6 = vunpack.c.h.bf16 %v2305_v50  ;;  %v2102_v7 = vunpack.c.h.bf16 %v2394_v51 }
  0xd7   :  { %v1227_v48 = vadd.f32 %v1226_v40, %v867_v32  ;;  %v1409_v49 = vadd.f32 %v1408_v41, %v1047_v33 }
  0xd8   :  { %v884_v22 = vmul.f32 %v2102_v7, %v1742_v6  ;;  %v1064_v23 = vadd.f32 %v2102_v7, %v1742_v6  ;;  %v2311_v6 = vld [vmem:[#allocation2 + $0x1c8] sm:$0xff]   ;;  %v2400_v7 = vld [vmem:[#allocation5 + $0x1c8] sm:$0xff]  }
  0xd9   :  { %v1228_v54 = vadd.f32 %v1227_v48, %v868_v38  ;;  %v1410_v55 = vadd.f32 %v1409_v49, %v1048_v39  ;;  %v877_v38 = vmul.f32 %v2089_v21, %v1729_v20  ;;  %v1057_v39 = vadd.f32 %v2089_v21, %v1729_v20 }
  0xda   :  { %v1737_v48 = vunpack.c.l.bf16 %v2304_v36  ;;  %v2097_v49 = vunpack.c.l.bf16 %v2393_v37  ;;  %v1746_v20 = vunpack.c.h.bf16 %v2306_v0  ;;  %v2106_v21 = vunpack.c.h.bf16 %v2395_v1 }
  0xdb   :  { %v1229_v62 = vadd.f32 %v1228_v54, %v869_v46  ;;  %v1411_v63 = vadd.f32 %v1410_v55, %v1049_v47 }
  0xdc   :  { %v886_v36 = vmul.f32 %v2106_v21, %v1746_v20  ;;  %v1066_v37 = vadd.f32 %v2106_v21, %v1746_v20  ;;  %v2312_v20 = vld [vmem:[#allocation2 + $0x1d0] sm:$0xff]   ;;  %v2401_v21 = vld [vmem:[#allocation5 + $0x1d0] sm:$0xff]  }
  0xdd   :  { %v1230_v4 = vadd.f32 %v1229_v62, %v870_v52  ;;  %v1412_v5 = vadd.f32 %v1411_v63, %v1050_v53  ;;  %v879_v52 = vmul.f32 %v2093_v35, %v1733_v34  ;;  %v1059_v53 = vadd.f32 %v2093_v35, %v1733_v34 }
  0xde   :  { %v1741_v62 = vunpack.c.l.bf16 %v2305_v50  ;;  %v2101_v63 = vunpack.c.l.bf16 %v2394_v51  ;;  %v1750_v34 = vunpack.c.h.bf16 %v2307_v14  ;;  %v2110_v35 = vunpack.c.h.bf16 %v2396_v15 }
  0xdf   :  { %v1231_v12 = vadd.f32 %v1230_v4, %v871_v60  ;;  %v1413_v13 = vadd.f32 %v1412_v5, %v1051_v61 }
  0xe0   :  { %v888_v50 = vmul.f32 %v2110_v35, %v1750_v34  ;;  %v1068_v51 = vadd.f32 %v2110_v35, %v1750_v34  ;;  %v2313_v34 = vld [vmem:[#allocation2 + $0x1d8] sm:$0xff]   ;;  %v2402_v35 = vld [vmem:[#allocation5 + $0x1d8] sm:$0xff]  }
  0xe1   :  { %v1232_v18 = vadd.f32 %v1231_v12, %v872_v2  ;;  %v1414_v19 = vadd.f32 %v1413_v13, %v1052_v3  ;;  %v881_v2 = vmul.f32 %v2097_v49, %v1737_v48  ;;  %v1061_v3 = vadd.f32 %v2097_v49, %v1737_v48 }
  0xe2   :  { %v1745_v12 = vunpack.c.l.bf16 %v2306_v0  ;;  %v2105_v13 = vunpack.c.l.bf16 %v2395_v1  ;;  %v1754_v48 = vunpack.c.h.bf16 %v2308_v28  ;;  %v2114_v49 = vunpack.c.h.bf16 %v2397_v29 }
  0xe3   :  { %v1233_v26 = vadd.f32 %v1232_v18, %v873_v10  ;;  %v1415_v27 = vadd.f32 %v1414_v19, %v1053_v11 }
  0xe4   :  { %v890_v0 = vmul.f32 %v2114_v49, %v1754_v48  ;;  %v1070_v1 = vadd.f32 %v2114_v49, %v1754_v48  ;;  %v2314_v48 = vld [vmem:[#allocation2 + $0x1e0] sm:$0xff]   ;;  %v2403_v49 = vld [vmem:[#allocation5 + $0x1e0] sm:$0xff]  }
  0xe5   :  { %v1234_v32 = vadd.f32 %v1233_v26, %v874_v16  ;;  %v1416_v33 = vadd.f32 %v1415_v27, %v1054_v17  ;;  %v883_v16 = vmul.f32 %v2101_v63, %v1741_v62  ;;  %v1063_v17 = vadd.f32 %v2101_v63, %v1741_v62 }
  0xe6   :  { %v1749_v26 = vunpack.c.l.bf16 %v2307_v14  ;;  %v2109_v27 = vunpack.c.l.bf16 %v2396_v15  ;;  %v1758_v62 = vunpack.c.h.bf16 %v2309_v42  ;;  %v2118_v63 = vunpack.c.h.bf16 %v2398_v43 }
  0xe7   :  { %v1235_v40 = vadd.f32 %v1234_v32, %v875_v24  ;;  %v1417_v41 = vadd.f32 %v1416_v33, %v1055_v25 }
  0xe8   :  { %v892_v14 = vmul.f32 %v2118_v63, %v1758_v62  ;;  %v1072_v15 = vadd.f32 %v2118_v63, %v1758_v62  ;;  %v2315_v62 = vld [vmem:[#allocation2 + $0x1e8] sm:$0xff]   ;;  %v2404_v63 = vld [vmem:[#allocation5 + $0x1e8] sm:$0xff]  }
  0xe9   :  { %v1236_v46 = vadd.f32 %v1235_v40, %v876_v30  ;;  %v1418_v47 = vadd.f32 %v1417_v41, %v1056_v31  ;;  %v885_v30 = vmul.f32 %v2105_v13, %v1745_v12  ;;  %v1065_v31 = vadd.f32 %v2105_v13, %v1745_v12 }
  0xea   :  { %v1753_v40 = vunpack.c.l.bf16 %v2308_v28  ;;  %v2113_v41 = vunpack.c.l.bf16 %v2397_v29  ;;  %v1762_v12 = vunpack.c.h.bf16 %v2310_v56  ;;  %v2122_v13 = vunpack.c.h.bf16 %v2399_v57 }
  0xeb   :  { %v1237_v54 = vadd.f32 %v1236_v46, %v877_v38  ;;  %v1419_v55 = vadd.f32 %v1418_v47, %v1057_v39 }
  0xec   :  { %v894_v28 = vmul.f32 %v2122_v13, %v1762_v12  ;;  %v1074_v29 = vadd.f32 %v2122_v13, %v1762_v12  ;;  %v2316_v12 = vld [vmem:[#allocation2 + $0x1f0] sm:$0xff]   ;;  %v2405_v13 = vld [vmem:[#allocation5 + $0x1f0] sm:$0xff]  }
  0xed   :  { %v1238_v60 = vadd.f32 %v1237_v54, %v878_v44  ;;  %v1420_v61 = vadd.f32 %v1419_v55, %v1058_v45  ;;  %v887_v44 = vmul.f32 %v2109_v27, %v1749_v26  ;;  %v1067_v45 = vadd.f32 %v2109_v27, %v1749_v26 }
  0xee   :  { %v1757_v54 = vunpack.c.l.bf16 %v2309_v42  ;;  %v2117_v55 = vunpack.c.l.bf16 %v2398_v43  ;;  %v1766_v26 = vunpack.c.h.bf16 %v2311_v6  ;;  %v2126_v27 = vunpack.c.h.bf16 %v2400_v7 }
  0xef   :  { %v1239_v4 = vadd.f32 %v1238_v60, %v879_v52  ;;  %v1421_v5 = vadd.f32 %v1420_v61, %v1059_v53 }
  0xf0   :  { %v896_v42 = vmul.f32 %v2126_v27, %v1766_v26  ;;  %v1076_v43 = vadd.f32 %v2126_v27, %v1766_v26  ;;  %v2317_v26 = vld [vmem:[#allocation2 + $0x1f8] sm:$0xff]   ;;  %v2406_v27 = vld [vmem:[#allocation5 + $0x1f8] sm:$0xff]  }
  0xf1   :  { %v1240_v10 = vadd.f32 %v1239_v4, %v880_v58  ;;  %v1422_v11 = vadd.f32 %v1421_v5, %v1060_v59  ;;  %v889_v58 = vmul.f32 %v2113_v41, %v1753_v40  ;;  %v1069_v59 = vadd.f32 %v2113_v41, %v1753_v40 }
  0xf2   :  { %v1761_v4 = vunpack.c.l.bf16 %v2310_v56  ;;  %v2121_v5 = vunpack.c.l.bf16 %v2399_v57  ;;  %v1770_v40 = vunpack.c.h.bf16 %v2312_v20  ;;  %v2130_v41 = vunpack.c.h.bf16 %v2401_v21 }
  0xf3   :  { %v1241_v18 = vadd.f32 %v1240_v10, %v881_v2  ;;  %v1423_v19 = vadd.f32 %v1422_v11, %v1061_v3 }
  0xf4   :  { %v898_v56 = vmul.f32 %v2130_v41, %v1770_v40  ;;  %v1078_v57 = vadd.f32 %v2130_v41, %v1770_v40  ;;  %v2318_v40 = vld [vmem:[#allocation2 + $0x200] sm:$0xff]   ;;  %v2407_v41 = vld [vmem:[#allocation5 + $0x200] sm:$0xff]  }
  0xf5   :  { %v1242_v24 = vadd.f32 %v1241_v18, %v882_v8  ;;  %v1424_v25 = vadd.f32 %v1423_v19, %v1062_v9  ;;  %v891_v8 = vmul.f32 %v2117_v55, %v1757_v54  ;;  %v1071_v9 = vadd.f32 %v2117_v55, %v1757_v54 }
  0xf6   :  { %v1765_v18 = vunpack.c.l.bf16 %v2311_v6  ;;  %v2125_v19 = vunpack.c.l.bf16 %v2400_v7  ;;  %v1774_v54 = vunpack.c.h.bf16 %v2313_v34  ;;  %v2134_v55 = vunpack.c.h.bf16 %v2402_v35 }
  0xf7   :  { %v1243_v32 = vadd.f32 %v1242_v24, %v883_v16  ;;  %v1425_v33 = vadd.f32 %v1424_v25, %v1063_v17 }
  0xf8   :  { %v900_v6 = vmul.f32 %v2134_v55, %v1774_v54  ;;  %v1080_v7 = vadd.f32 %v2134_v55, %v1774_v54  ;;  %v2319_v54 = vld [vmem:[#allocation2 + $0x208] sm:$0xff]   ;;  %v2408_v55 = vld [vmem:[#allocation5 + $0x208] sm:$0xff]  }
  0xf9   :  { %v1244_v38 = vadd.f32 %v1243_v32, %v884_v22  ;;  %v1426_v39 = vadd.f32 %v1425_v33, %v1064_v23  ;;  %v893_v22 = vmul.f32 %v2121_v5, %v1761_v4  ;;  %v1073_v23 = vadd.f32 %v2121_v5, %v1761_v4 }
  0xfa   :  { %v1769_v32 = vunpack.c.l.bf16 %v2312_v20  ;;  %v2129_v33 = vunpack.c.l.bf16 %v2401_v21  ;;  %v1778_v4 = vunpack.c.h.bf16 %v2314_v48  ;;  %v2138_v5 = vunpack.c.h.bf16 %v2403_v49 }
  0xfb   :  { %v1245_v46 = vadd.f32 %v1244_v38, %v885_v30  ;;  %v1427_v47 = vadd.f32 %v1426_v39, %v1065_v31 }
  0xfc   :  { %v902_v20 = vmul.f32 %v2138_v5, %v1778_v4  ;;  %v1082_v21 = vadd.f32 %v2138_v5, %v1778_v4  ;;  %v2320_v4 = vld [vmem:[#allocation2 + $0x210] sm:$0xff]   ;;  %v2409_v5 = vld [vmem:[#allocation5 + $0x210] sm:$0xff]  }
  0xfd   :  { %v1246_v52 = vadd.f32 %v1245_v46, %v886_v36  ;;  %v1428_v53 = vadd.f32 %v1427_v47, %v1066_v37  ;;  %v895_v36 = vmul.f32 %v2125_v19, %v1765_v18  ;;  %v1075_v37 = vadd.f32 %v2125_v19, %v1765_v18 }
  0xfe   :  { %v1773_v46 = vunpack.c.l.bf16 %v2313_v34  ;;  %v2133_v47 = vunpack.c.l.bf16 %v2402_v35  ;;  %v1782_v18 = vunpack.c.h.bf16 %v2315_v62  ;;  %v2142_v19 = vunpack.c.h.bf16 %v2404_v63 }
  0xff   :  { %v1247_v60 = vadd.f32 %v1246_v52, %v887_v44  ;;  %v1429_v61 = vadd.f32 %v1428_v53, %v1067_v45 }
 0x100   :  { %v904_v34 = vmul.f32 %v2142_v19, %v1782_v18  ;;  %v1084_v35 = vadd.f32 %v2142_v19, %v1782_v18  ;;  %v2321_v18 = vld [vmem:[#allocation2 + $0x218] sm:$0xff]   ;;  %v2410_v19 = vld [vmem:[#allocation5 + $0x218] sm:$0xff]  }
 0x101   :  { %v1248_v2 = vadd.f32 %v1247_v60, %v888_v50  ;;  %v1430_v3 = vadd.f32 %v1429_v61, %v1068_v51  ;;  %v897_v50 = vmul.f32 %v2129_v33, %v1769_v32  ;;  %v1077_v51 = vadd.f32 %v2129_v33, %v1769_v32 }
 0x102   :  { %v1777_v60 = vunpack.c.l.bf16 %v2314_v48  ;;  %v2137_v61 = vunpack.c.l.bf16 %v2403_v49  ;;  %v1786_v32 = vunpack.c.h.bf16 %v2316_v12  ;;  %v2146_v33 = vunpack.c.h.bf16 %v2405_v13 }
 0x103   :  { %v1249_v10 = vadd.f32 %v1248_v2, %v889_v58  ;;  %v1431_v11 = vadd.f32 %v1430_v3, %v1069_v59 }
 0x104   :  { %v906_v48 = vmul.f32 %v2146_v33, %v1786_v32  ;;  %v1086_v49 = vadd.f32 %v2146_v33, %v1786_v32  ;;  %v2322_v32 = vld [vmem:[#allocation2 + $0x220] sm:$0xff]   ;;  %v2411_v33 = vld [vmem:[#allocation5 + $0x220] sm:$0xff]  }
 0x105   :  { %v1250_v16 = vadd.f32 %v1249_v10, %v890_v0  ;;  %v1432_v17 = vadd.f32 %v1431_v11, %v1070_v1  ;;  %v899_v0 = vmul.f32 %v2133_v47, %v1773_v46  ;;  %v1079_v1 = vadd.f32 %v2133_v47, %v1773_v46 }
 0x106   :  { %v1781_v10 = vunpack.c.l.bf16 %v2315_v62  ;;  %v2141_v11 = vunpack.c.l.bf16 %v2404_v63  ;;  %v1790_v46 = vunpack.c.h.bf16 %v2317_v26  ;;  %v2150_v47 = vunpack.c.h.bf16 %v2406_v27 }
 0x107   :  { %v1251_v24 = vadd.f32 %v1250_v16, %v891_v8  ;;  %v1433_v25 = vadd.f32 %v1432_v17, %v1071_v9 }
 0x108   :  { %v908_v62 = vmul.f32 %v2150_v47, %v1790_v46  ;;  %v1088_v63 = vadd.f32 %v2150_v47, %v1790_v46  ;;  %v2323_v46 = vld [vmem:[#allocation2 + $0x228] sm:$0xff]   ;;  %v2412_v47 = vld [vmem:[#allocation5 + $0x228] sm:$0xff]  }
 0x109   :  { %v1252_v30 = vadd.f32 %v1251_v24, %v892_v14  ;;  %v1434_v31 = vadd.f32 %v1433_v25, %v1072_v15  ;;  %v901_v14 = vmul.f32 %v2137_v61, %v1777_v60  ;;  %v1081_v15 = vadd.f32 %v2137_v61, %v1777_v60 }
 0x10a   :  { %v1785_v24 = vunpack.c.l.bf16 %v2316_v12  ;;  %v2145_v25 = vunpack.c.l.bf16 %v2405_v13  ;;  %v1794_v60 = vunpack.c.h.bf16 %v2318_v40  ;;  %v2154_v61 = vunpack.c.h.bf16 %v2407_v41 }
 0x10b   :  { %v1253_v38 = vadd.f32 %v1252_v30, %v893_v22  ;;  %v1435_v39 = vadd.f32 %v1434_v31, %v1073_v23 }
 0x10c   :  { %v910_v12 = vmul.f32 %v2154_v61, %v1794_v60  ;;  %v1090_v13 = vadd.f32 %v2154_v61, %v1794_v60  ;;  %v2324_v60 = vld [vmem:[#allocation2 + $0x230] sm:$0xff]   ;;  %v2413_v61 = vld [vmem:[#allocation5 + $0x230] sm:$0xff]  }
 0x10d   :  { %v1254_v44 = vadd.f32 %v1253_v38, %v894_v28  ;;  %v1436_v45 = vadd.f32 %v1435_v39, %v1074_v29  ;;  %v903_v28 = vmul.f32 %v2141_v11, %v1781_v10  ;;  %v1083_v29 = vadd.f32 %v2141_v11, %v1781_v10 }
 0x10e   :  { %v1789_v38 = vunpack.c.l.bf16 %v2317_v26  ;;  %v2149_v39 = vunpack.c.l.bf16 %v2406_v27  ;;  %v1798_v10 = vunpack.c.h.bf16 %v2319_v54  ;;  %v2158_v11 = vunpack.c.h.bf16 %v2408_v55 }
 0x10f   :  { %v1255_v52 = vadd.f32 %v1254_v44, %v895_v36  ;;  %v1437_v53 = vadd.f32 %v1436_v45, %v1075_v37 }
 0x110   :  { %v912_v26 = vmul.f32 %v2158_v11, %v1798_v10  ;;  %v1092_v27 = vadd.f32 %v2158_v11, %v1798_v10  ;;  %v2325_v10 = vld [vmem:[#allocation2 + $0x238] sm:$0xff]   ;;  %v2414_v11 = vld [vmem:[#allocation5 + $0x238] sm:$0xff]  }
 0x111   :  { %v1256_v58 = vadd.f32 %v1255_v52, %v896_v42  ;;  %v1438_v59 = vadd.f32 %v1437_v53, %v1076_v43  ;;  %v905_v42 = vmul.f32 %v2145_v25, %v1785_v24  ;;  %v1085_v43 = vadd.f32 %v2145_v25, %v1785_v24 }
 0x112   :  { %v1793_v52 = vunpack.c.l.bf16 %v2318_v40  ;;  %v2153_v53 = vunpack.c.l.bf16 %v2407_v41  ;;  %v1802_v24 = vunpack.c.h.bf16 %v2320_v4  ;;  %v2162_v25 = vunpack.c.h.bf16 %v2409_v5 }
 0x113   :  { %v1257_v2 = vadd.f32 %v1256_v58, %v897_v50  ;;  %v1439_v3 = vadd.f32 %v1438_v59, %v1077_v51 }
 0x114   :  { %v914_v40 = vmul.f32 %v2162_v25, %v1802_v24  ;;  %v1094_v41 = vadd.f32 %v2162_v25, %v1802_v24  ;;  %v2326_v24 = vld [vmem:[#allocation2 + $0x240] sm:$0xff]   ;;  %v2415_v25 = vld [vmem:[#allocation5 + $0x240] sm:$0xff]  }
 0x115   :  { %v1258_v8 = vadd.f32 %v1257_v2, %v898_v56  ;;  %v1440_v9 = vadd.f32 %v1439_v3, %v1078_v57  ;;  %v907_v56 = vmul.f32 %v2149_v39, %v1789_v38  ;;  %v1087_v57 = vadd.f32 %v2149_v39, %v1789_v38 }
 0x116   :  { %v1797_v2 = vunpack.c.l.bf16 %v2319_v54  ;;  %v2157_v3 = vunpack.c.l.bf16 %v2408_v55  ;;  %v1806_v38 = vunpack.c.h.bf16 %v2321_v18  ;;  %v2166_v39 = vunpack.c.h.bf16 %v2410_v19 }
 0x117   :  { %v1259_v16 = vadd.f32 %v1258_v8, %v899_v0  ;;  %v1441_v17 = vadd.f32 %v1440_v9, %v1079_v1 }
 0x118   :  { %v916_v54 = vmul.f32 %v2166_v39, %v1806_v38  ;;  %v1096_v55 = vadd.f32 %v2166_v39, %v1806_v38  ;;  %v2327_v38 = vld [vmem:[#allocation2 + $0x248] sm:$0xff]   ;;  %v2416_v39 = vld [vmem:[#allocation5 + $0x248] sm:$0xff]  }
 0x119   :  { %v1260_v22 = vadd.f32 %v1259_v16, %v900_v6  ;;  %v1442_v23 = vadd.f32 %v1441_v17, %v1080_v7  ;;  %v909_v6 = vmul.f32 %v2153_v53, %v1793_v52  ;;  %v1089_v7 = vadd.f32 %v2153_v53, %v1793_v52 }
 0x11a   :  { %v1801_v16 = vunpack.c.l.bf16 %v2320_v4  ;;  %v2161_v17 = vunpack.c.l.bf16 %v2409_v5  ;;  %v1810_v52 = vunpack.c.h.bf16 %v2322_v32  ;;  %v2170_v53 = vunpack.c.h.bf16 %v2411_v33 }
 0x11b   :  { %v1261_v30 = vadd.f32 %v1260_v22, %v901_v14  ;;  %v1443_v31 = vadd.f32 %v1442_v23, %v1081_v15 }
 0x11c   :  { %v918_v4 = vmul.f32 %v2170_v53, %v1810_v52  ;;  %v1098_v5 = vadd.f32 %v2170_v53, %v1810_v52  ;;  %v2328_v52 = vld [vmem:[#allocation2 + $0x250] sm:$0xff]   ;;  %v2417_v53 = vld [vmem:[#allocation5 + $0x250] sm:$0xff]  }
 0x11d   :  { %v1262_v36 = vadd.f32 %v1261_v30, %v902_v20  ;;  %v1444_v37 = vadd.f32 %v1443_v31, %v1082_v21  ;;  %v911_v20 = vmul.f32 %v2157_v3, %v1797_v2  ;;  %v1091_v21 = vadd.f32 %v2157_v3, %v1797_v2 }
 0x11e   :  { %v1805_v30 = vunpack.c.l.bf16 %v2321_v18  ;;  %v2165_v31 = vunpack.c.l.bf16 %v2410_v19  ;;  %v1814_v2 = vunpack.c.h.bf16 %v2323_v46  ;;  %v2174_v3 = vunpack.c.h.bf16 %v2412_v47 }
 0x11f   :  { %v1263_v44 = vadd.f32 %v1262_v36, %v903_v28  ;;  %v1445_v45 = vadd.f32 %v1444_v37, %v1083_v29 }
 0x120   :  { %v920_v18 = vmul.f32 %v2174_v3, %v1814_v2  ;;  %v1100_v19 = vadd.f32 %v2174_v3, %v1814_v2  ;;  %v2329_v2 = vld [vmem:[#allocation2 + $0x258] sm:$0xff]   ;;  %v2418_v3 = vld [vmem:[#allocation5 + $0x258] sm:$0xff]  }
 0x121   :  { %v1264_v50 = vadd.f32 %v1263_v44, %v904_v34  ;;  %v1446_v51 = vadd.f32 %v1445_v45, %v1084_v35  ;;  %v913_v34 = vmul.f32 %v2161_v17, %v1801_v16  ;;  %v1093_v35 = vadd.f32 %v2161_v17, %v1801_v16 }
 0x122   :  { %v1809_v44 = vunpack.c.l.bf16 %v2322_v32  ;;  %v2169_v45 = vunpack.c.l.bf16 %v2411_v33  ;;  %v1818_v16 = vunpack.c.h.bf16 %v2324_v60  ;;  %v2178_v17 = vunpack.c.h.bf16 %v2413_v61 }
 0x123   :  { %v1265_v58 = vadd.f32 %v1264_v50, %v905_v42  ;;  %v1447_v59 = vadd.f32 %v1446_v51, %v1085_v43 }
 0x124   :  { %v922_v32 = vmul.f32 %v2178_v17, %v1818_v16  ;;  %v1102_v33 = vadd.f32 %v2178_v17, %v1818_v16  ;;  %v2330_v16 = vld [vmem:[#allocation2 + $0x260] sm:$0xff]   ;;  %v2419_v17 = vld [vmem:[#allocation5 + $0x260] sm:$0xff]  }
 0x125   :  { %v1266_v0 = vadd.f32 %v1265_v58, %v906_v48  ;;  %v1448_v1 = vadd.f32 %v1447_v59, %v1086_v49  ;;  %v915_v48 = vmul.f32 %v2165_v31, %v1805_v30  ;;  %v1095_v49 = vadd.f32 %v2165_v31, %v1805_v30 }
 0x126   :  { %v1813_v58 = vunpack.c.l.bf16 %v2323_v46  ;;  %v2173_v59 = vunpack.c.l.bf16 %v2412_v47  ;;  %v1822_v30 = vunpack.c.h.bf16 %v2325_v10  ;;  %v2182_v31 = vunpack.c.h.bf16 %v2414_v11 }
 0x127   :  { %v1267_v8 = vadd.f32 %v1266_v0, %v907_v56  ;;  %v1449_v9 = vadd.f32 %v1448_v1, %v1087_v57 }
 0x128   :  { %v924_v46 = vmul.f32 %v2182_v31, %v1822_v30  ;;  %v1104_v47 = vadd.f32 %v2182_v31, %v1822_v30  ;;  %v2331_v30 = vld [vmem:[#allocation2 + $0x268] sm:$0xff]   ;;  %v2420_v31 = vld [vmem:[#allocation5 + $0x268] sm:$0xff]  }
 0x129   :  { %v1268_v14 = vadd.f32 %v1267_v8, %v908_v62  ;;  %v1450_v15 = vadd.f32 %v1449_v9, %v1088_v63  ;;  %v917_v62 = vmul.f32 %v2169_v45, %v1809_v44  ;;  %v1097_v63 = vadd.f32 %v2169_v45, %v1809_v44 }
 0x12a   :  { %v1817_v8 = vunpack.c.l.bf16 %v2324_v60  ;;  %v2177_v9 = vunpack.c.l.bf16 %v2413_v61  ;;  %v1826_v44 = vunpack.c.h.bf16 %v2326_v24  ;;  %v2186_v45 = vunpack.c.h.bf16 %v2415_v25 }
 0x12b   :  { %v1269_v22 = vadd.f32 %v1268_v14, %v909_v6  ;;  %v1451_v23 = vadd.f32 %v1450_v15, %v1089_v7 }
 0x12c   :  { %v926_v60 = vmul.f32 %v2186_v45, %v1826_v44  ;;  %v1106_v61 = vadd.f32 %v2186_v45, %v1826_v44  ;;  %v2332_v44 = vld [vmem:[#allocation2 + $0x270] sm:$0xff]   ;;  %v2421_v45 = vld [vmem:[#allocation5 + $0x270] sm:$0xff]  }
 0x12d   :  { %v1270_v28 = vadd.f32 %v1269_v22, %v910_v12  ;;  %v1452_v29 = vadd.f32 %v1451_v23, %v1090_v13  ;;  %v919_v12 = vmul.f32 %v2173_v59, %v1813_v58  ;;  %v1099_v13 = vadd.f32 %v2173_v59, %v1813_v58 }
 0x12e   :  { %v1821_v22 = vunpack.c.l.bf16 %v2325_v10  ;;  %v2181_v23 = vunpack.c.l.bf16 %v2414_v11  ;;  %v1830_v58 = vunpack.c.h.bf16 %v2327_v38  ;;  %v2190_v59 = vunpack.c.h.bf16 %v2416_v39 }
 0x12f   :  { %v1271_v36 = vadd.f32 %v1270_v28, %v911_v20  ;;  %v1453_v37 = vadd.f32 %v1452_v29, %v1091_v21 }
 0x130   :  { %v928_v10 = vmul.f32 %v2190_v59, %v1830_v58  ;;  %v1108_v11 = vadd.f32 %v2190_v59, %v1830_v58  ;;  %v2333_v58 = vld [vmem:[#allocation2 + $0x278] sm:$0xff]   ;;  %v2422_v59 = vld [vmem:[#allocation5 + $0x278] sm:$0xff]  }
 0x131   :  { %v1272_v42 = vadd.f32 %v1271_v36, %v912_v26  ;;  %v1454_v43 = vadd.f32 %v1453_v37, %v1092_v27  ;;  %v921_v26 = vmul.f32 %v2177_v9, %v1817_v8  ;;  %v1101_v27 = vadd.f32 %v2177_v9, %v1817_v8 }
 0x132   :  { %v1825_v36 = vunpack.c.l.bf16 %v2326_v24  ;;  %v2185_v37 = vunpack.c.l.bf16 %v2415_v25  ;;  %v1834_v8 = vunpack.c.h.bf16 %v2328_v52  ;;  %v2194_v9 = vunpack.c.h.bf16 %v2417_v53 }
 0x133   :  { %v1273_v50 = vadd.f32 %v1272_v42, %v913_v34  ;;  %v1455_v51 = vadd.f32 %v1454_v43, %v1093_v35 }
 0x134   :  { %v930_v24 = vmul.f32 %v2194_v9, %v1834_v8  ;;  %v1110_v25 = vadd.f32 %v2194_v9, %v1834_v8  ;;  %v2334_v8 = vld [vmem:[#allocation2 + $0x280] sm:$0xff]   ;;  %v2423_v9 = vld [vmem:[#allocation5 + $0x280] sm:$0xff]  }
 0x135   :  { %v1274_v56 = vadd.f32 %v1273_v50, %v914_v40  ;;  %v1456_v57 = vadd.f32 %v1455_v51, %v1094_v41  ;;  %v923_v40 = vmul.f32 %v2181_v23, %v1821_v22  ;;  %v1103_v41 = vadd.f32 %v2181_v23, %v1821_v22 }
 0x136   :  { %v1829_v50 = vunpack.c.l.bf16 %v2327_v38  ;;  %v2189_v51 = vunpack.c.l.bf16 %v2416_v39  ;;  %v1838_v22 = vunpack.c.h.bf16 %v2329_v2  ;;  %v2198_v23 = vunpack.c.h.bf16 %v2418_v3 }
 0x137   :  { %v1275_v0 = vadd.f32 %v1274_v56, %v915_v48  ;;  %v1457_v1 = vadd.f32 %v1456_v57, %v1095_v49 }
 0x138   :  { %v932_v38 = vmul.f32 %v2198_v23, %v1838_v22  ;;  %v1112_v39 = vadd.f32 %v2198_v23, %v1838_v22  ;;  %v2335_v22 = vld [vmem:[#allocation2 + $0x288] sm:$0xff]   ;;  %v2424_v23 = vld [vmem:[#allocation5 + $0x288] sm:$0xff]  }
 0x139   :  { %v1276_v6 = vadd.f32 %v1275_v0, %v916_v54  ;;  %v1458_v7 = vadd.f32 %v1457_v1, %v1096_v55  ;;  %v925_v54 = vmul.f32 %v2185_v37, %v1825_v36  ;;  %v1105_v55 = vadd.f32 %v2185_v37, %v1825_v36 }
 0x13a   :  { %v1833_v0 = vunpack.c.l.bf16 %v2328_v52  ;;  %v2193_v1 = vunpack.c.l.bf16 %v2417_v53  ;;  %v1842_v36 = vunpack.c.h.bf16 %v2330_v16  ;;  %v2202_v37 = vunpack.c.h.bf16 %v2419_v17 }
 0x13b   :  { %v1277_v14 = vadd.f32 %v1276_v6, %v917_v62  ;;  %v1459_v15 = vadd.f32 %v1458_v7, %v1097_v63 }
 0x13c   :  { %v934_v52 = vmul.f32 %v2202_v37, %v1842_v36  ;;  %v1114_v53 = vadd.f32 %v2202_v37, %v1842_v36  ;;  %v2336_v36 = vld [vmem:[#allocation2 + $0x290] sm:$0xff]   ;;  %v2425_v37 = vld [vmem:[#allocation5 + $0x290] sm:$0xff]  }
 0x13d   :  { %v1278_v20 = vadd.f32 %v1277_v14, %v918_v4  ;;  %v1460_v21 = vadd.f32 %v1459_v15, %v1098_v5  ;;  %v927_v4 = vmul.f32 %v2189_v51, %v1829_v50  ;;  %v1107_v5 = vadd.f32 %v2189_v51, %v1829_v50 }
 0x13e   :  { %v1837_v14 = vunpack.c.l.bf16 %v2329_v2  ;;  %v2197_v15 = vunpack.c.l.bf16 %v2418_v3  ;;  %v1846_v50 = vunpack.c.h.bf16 %v2331_v30  ;;  %v2206_v51 = vunpack.c.h.bf16 %v2420_v31 }
 0x13f   :  { %v1279_v28 = vadd.f32 %v1278_v20, %v919_v12  ;;  %v1461_v29 = vadd.f32 %v1460_v21, %v1099_v13 }
 0x140   :  { %v936_v2 = vmul.f32 %v2206_v51, %v1846_v50  ;;  %v1116_v3 = vadd.f32 %v2206_v51, %v1846_v50  ;;  %v2337_v50 = vld [vmem:[#allocation2 + $0x298] sm:$0xff]   ;;  %v2426_v51 = vld [vmem:[#allocation5 + $0x298] sm:$0xff]  }
 0x141   :  { %v1280_v34 = vadd.f32 %v1279_v28, %v920_v18  ;;  %v1462_v35 = vadd.f32 %v1461_v29, %v1100_v19  ;;  %v929_v18 = vmul.f32 %v2193_v1, %v1833_v0  ;;  %v1109_v19 = vadd.f32 %v2193_v1, %v1833_v0 }
 0x142   :  { %v1841_v28 = vunpack.c.l.bf16 %v2330_v16  ;;  %v2201_v29 = vunpack.c.l.bf16 %v2419_v17  ;;  %v1850_v0 = vunpack.c.h.bf16 %v2332_v44  ;;  %v2210_v1 = vunpack.c.h.bf16 %v2421_v45 }
 0x143   :  { %v1281_v42 = vadd.f32 %v1280_v34, %v921_v26  ;;  %v1463_v43 = vadd.f32 %v1462_v35, %v1101_v27 }
 0x144   :  { %v938_v16 = vmul.f32 %v2210_v1, %v1850_v0  ;;  %v1118_v17 = vadd.f32 %v2210_v1, %v1850_v0  ;;  %v2338_v0 = vld [vmem:[#allocation2 + $0x2a0] sm:$0xff]   ;;  %v2427_v1 = vld [vmem:[#allocation5 + $0x2a0] sm:$0xff]  }
 0x145   :  { %v1282_v48 = vadd.f32 %v1281_v42, %v922_v32  ;;  %v1464_v49 = vadd.f32 %v1463_v43, %v1102_v33  ;;  %v931_v32 = vmul.f32 %v2197_v15, %v1837_v14  ;;  %v1111_v33 = vadd.f32 %v2197_v15, %v1837_v14 }
 0x146   :  { %v1845_v42 = vunpack.c.l.bf16 %v2331_v30  ;;  %v2205_v43 = vunpack.c.l.bf16 %v2420_v31  ;;  %v1854_v14 = vunpack.c.h.bf16 %v2333_v58  ;;  %v2214_v15 = vunpack.c.h.bf16 %v2422_v59 }
 0x147   :  { %v1283_v56 = vadd.f32 %v1282_v48, %v923_v40  ;;  %v1465_v57 = vadd.f32 %v1464_v49, %v1103_v41 }
 0x148   :  { %v940_v30 = vmul.f32 %v2214_v15, %v1854_v14  ;;  %v1120_v31 = vadd.f32 %v2214_v15, %v1854_v14  ;;  %v2339_v14 = vld [vmem:[#allocation2 + $0x2a8] sm:$0xff]   ;;  %v2428_v15 = vld [vmem:[#allocation5 + $0x2a8] sm:$0xff]  }
 0x149   :  { %v1284_v62 = vadd.f32 %v1283_v56, %v924_v46  ;;  %v1466_v63 = vadd.f32 %v1465_v57, %v1104_v47  ;;  %v933_v46 = vmul.f32 %v2201_v29, %v1841_v28  ;;  %v1113_v47 = vadd.f32 %v2201_v29, %v1841_v28 }
 0x14a   :  { %v1849_v56 = vunpack.c.l.bf16 %v2332_v44  ;;  %v2209_v57 = vunpack.c.l.bf16 %v2421_v45  ;;  %v1858_v28 = vunpack.c.h.bf16 %v2334_v8  ;;  %v2218_v29 = vunpack.c.h.bf16 %v2423_v9 }
 0x14b   :  { %v1285_v6 = vadd.f32 %v1284_v62, %v925_v54  ;;  %v1467_v7 = vadd.f32 %v1466_v63, %v1105_v55 }
 0x14c   :  { %v942_v44 = vmul.f32 %v2218_v29, %v1858_v28  ;;  %v1122_v45 = vadd.f32 %v2218_v29, %v1858_v28  ;;  %v2340_v28 = vld [vmem:[#allocation2 + $0x2b0] sm:$0xff]   ;;  %v2429_v29 = vld [vmem:[#allocation5 + $0x2b0] sm:$0xff]  }
 0x14d   :  { %v1286_v12 = vadd.f32 %v1285_v6, %v926_v60  ;;  %v1468_v13 = vadd.f32 %v1467_v7, %v1106_v61  ;;  %v935_v60 = vmul.f32 %v2205_v43, %v1845_v42  ;;  %v1115_v61 = vadd.f32 %v2205_v43, %v1845_v42 }
 0x14e   :  { %v1853_v6 = vunpack.c.l.bf16 %v2333_v58  ;;  %v2213_v7 = vunpack.c.l.bf16 %v2422_v59  ;;  %v1862_v42 = vunpack.c.h.bf16 %v2335_v22  ;;  %v2222_v43 = vunpack.c.h.bf16 %v2424_v23 }
 0x14f   :  { %v1287_v20 = vadd.f32 %v1286_v12, %v927_v4  ;;  %v1469_v21 = vadd.f32 %v1468_v13, %v1107_v5 }
 0x150   :  { %v944_v58 = vmul.f32 %v2222_v43, %v1862_v42  ;;  %v1124_v59 = vadd.f32 %v2222_v43, %v1862_v42  ;;  %v2341_v42 = vld [vmem:[#allocation2 + $0x2b8] sm:$0xff]   ;;  %v2430_v43 = vld [vmem:[#allocation5 + $0x2b8] sm:$0xff]  }
 0x151   :  { %v1288_v26 = vadd.f32 %v1287_v20, %v928_v10  ;;  %v1470_v27 = vadd.f32 %v1469_v21, %v1108_v11  ;;  %v937_v10 = vmul.f32 %v2209_v57, %v1849_v56  ;;  %v1117_v11 = vadd.f32 %v2209_v57, %v1849_v56 }
 0x152   :  { %v1857_v20 = vunpack.c.l.bf16 %v2334_v8  ;;  %v2217_v21 = vunpack.c.l.bf16 %v2423_v9  ;;  %v1866_v56 = vunpack.c.h.bf16 %v2336_v36  ;;  %v2226_v57 = vunpack.c.h.bf16 %v2425_v37 }
 0x153   :  { %v1289_v34 = vadd.f32 %v1288_v26, %v929_v18  ;;  %v1471_v35 = vadd.f32 %v1470_v27, %v1109_v19 }
 0x154   :  { %v946_v8 = vmul.f32 %v2226_v57, %v1866_v56  ;;  %v1126_v9 = vadd.f32 %v2226_v57, %v1866_v56  ;;  %v2342_v56 = vld [vmem:[#allocation2 + $0x2c0] sm:$0xff]   ;;  %v2431_v57 = vld [vmem:[#allocation5 + $0x2c0] sm:$0xff]  }
 0x155   :  { %v1290_v40 = vadd.f32 %v1289_v34, %v930_v24  ;;  %v1472_v41 = vadd.f32 %v1471_v35, %v1110_v25  ;;  %v939_v24 = vmul.f32 %v2213_v7, %v1853_v6  ;;  %v1119_v25 = vadd.f32 %v2213_v7, %v1853_v6 }
 0x156   :  { %v1861_v34 = vunpack.c.l.bf16 %v2335_v22  ;;  %v2221_v35 = vunpack.c.l.bf16 %v2424_v23  ;;  %v1870_v6 = vunpack.c.h.bf16 %v2337_v50  ;;  %v2230_v7 = vunpack.c.h.bf16 %v2426_v51 }
 0x157   :  { %v1291_v48 = vadd.f32 %v1290_v40, %v931_v32  ;;  %v1473_v49 = vadd.f32 %v1472_v41, %v1111_v33 }
 0x158   :  { %v948_v22 = vmul.f32 %v2230_v7, %v1870_v6  ;;  %v1128_v23 = vadd.f32 %v2230_v7, %v1870_v6  ;;  %v2343_v6 = vld [vmem:[#allocation2 + $0x2c8] sm:$0xff]   ;;  %v2432_v7 = vld [vmem:[#allocation5 + $0x2c8] sm:$0xff]  }
 0x159   :  { %v1292_v54 = vadd.f32 %v1291_v48, %v932_v38  ;;  %v1474_v55 = vadd.f32 %v1473_v49, %v1112_v39  ;;  %v941_v38 = vmul.f32 %v2217_v21, %v1857_v20  ;;  %v1121_v39 = vadd.f32 %v2217_v21, %v1857_v20 }
 0x15a   :  { %v1865_v48 = vunpack.c.l.bf16 %v2336_v36  ;;  %v2225_v49 = vunpack.c.l.bf16 %v2425_v37  ;;  %v1874_v20 = vunpack.c.h.bf16 %v2338_v0  ;;  %v2234_v21 = vunpack.c.h.bf16 %v2427_v1 }
 0x15b   :  { %v1293_v62 = vadd.f32 %v1292_v54, %v933_v46  ;;  %v1475_v63 = vadd.f32 %v1474_v55, %v1113_v47 }
 0x15c   :  { %v950_v36 = vmul.f32 %v2234_v21, %v1874_v20  ;;  %v1130_v37 = vadd.f32 %v2234_v21, %v1874_v20 }
 0x15d   :  { %v1294_v4 = vadd.f32 %v1293_v62, %v934_v52  ;;  %v1476_v5 = vadd.f32 %v1475_v63, %v1114_v53  ;;  %v943_v52 = vmul.f32 %v2221_v35, %v1861_v34  ;;  %v1123_v53 = vadd.f32 %v2221_v35, %v1861_v34 }
 0x15e   :  { %v1869_v62 = vunpack.c.l.bf16 %v2337_v50  ;;  %v2229_v63 = vunpack.c.l.bf16 %v2426_v51  ;;  %v1878_v34 = vunpack.c.h.bf16 %v2339_v14  ;;  %v2238_v35 = vunpack.c.h.bf16 %v2428_v15 }
 0x15f   :  { %v1295_v12 = vadd.f32 %v1294_v4, %v935_v60  ;;  %v1477_v13 = vadd.f32 %v1476_v5, %v1115_v61 }
 0x160   :  { %v952_v50 = vmul.f32 %v2238_v35, %v1878_v34  ;;  %v1132_v51 = vadd.f32 %v2238_v35, %v1878_v34 }
 0x161   :  { %v1296_v18 = vadd.f32 %v1295_v12, %v936_v2  ;;  %v1478_v19 = vadd.f32 %v1477_v13, %v1116_v3  ;;  %v945_v2 = vmul.f32 %v2225_v49, %v1865_v48  ;;  %v1125_v3 = vadd.f32 %v2225_v49, %v1865_v48 }
 0x162   :  { %v1873_v12 = vunpack.c.l.bf16 %v2338_v0  ;;  %v2233_v13 = vunpack.c.l.bf16 %v2427_v1  ;;  %v1882_v48 = vunpack.c.h.bf16 %v2340_v28  ;;  %v2242_v49 = vunpack.c.h.bf16 %v2429_v29 }
 0x163   :  { %v1297_v26 = vadd.f32 %v1296_v18, %v937_v10  ;;  %v1479_v27 = vadd.f32 %v1478_v19, %v1117_v11 }
 0x164   :  { %v954_v0 = vmul.f32 %v2242_v49, %v1882_v48  ;;  %v1134_v1 = vadd.f32 %v2242_v49, %v1882_v48 }
 0x165   :  { %v1298_v32 = vadd.f32 %v1297_v26, %v938_v16  ;;  %v1480_v33 = vadd.f32 %v1479_v27, %v1118_v17  ;;  %v947_v16 = vmul.f32 %v2229_v63, %v1869_v62  ;;  %v1127_v17 = vadd.f32 %v2229_v63, %v1869_v62 }
 0x166   :  { %v1877_v26 = vunpack.c.l.bf16 %v2339_v14  ;;  %v2237_v27 = vunpack.c.l.bf16 %v2428_v15  ;;  %v1886_v62 = vunpack.c.h.bf16 %v2341_v42  ;;  %v2246_v63 = vunpack.c.h.bf16 %v2430_v43 }
 0x167   :  { %v1299_v40 = vadd.f32 %v1298_v32, %v939_v24  ;;  %v1481_v41 = vadd.f32 %v1480_v33, %v1119_v25 }
 0x168   :  { %v956_v14 = vmul.f32 %v2246_v63, %v1886_v62  ;;  %v1136_v15 = vadd.f32 %v2246_v63, %v1886_v62 }
 0x169   :  { %v1300_v46 = vadd.f32 %v1299_v40, %v940_v30  ;;  %v1482_v47 = vadd.f32 %v1481_v41, %v1120_v31  ;;  %v949_v30 = vmul.f32 %v2233_v13, %v1873_v12  ;;  %v1129_v31 = vadd.f32 %v2233_v13, %v1873_v12 }
 0x16a   :  { %v1881_v40 = vunpack.c.l.bf16 %v2340_v28  ;;  %v2241_v41 = vunpack.c.l.bf16 %v2429_v29  ;;  %v1890_v12 = vunpack.c.h.bf16 %v2342_v56  ;;  %v2250_v13 = vunpack.c.h.bf16 %v2431_v57 }
 0x16b   :  { %v1301_v54 = vadd.f32 %v1300_v46, %v941_v38  ;;  %v1483_v55 = vadd.f32 %v1482_v47, %v1121_v39 }
 0x16d   :  { %v1302_v60 = vadd.f32 %v1301_v54, %v942_v44  ;;  %v1484_v61 = vadd.f32 %v1483_v55, %v1122_v45  ;;  %v951_v44 = vmul.f32 %v2237_v27, %v1877_v26  ;;  %v1131_v45 = vadd.f32 %v2237_v27, %v1877_v26 }
 0x16e   :  { %v1885_v54 = vunpack.c.l.bf16 %v2341_v42  ;;  %v2245_v55 = vunpack.c.l.bf16 %v2430_v43  ;;  %v958_v26 = vmul.f32 %v2250_v13, %v1890_v12  ;;  %v1138_v27 = vadd.f32 %v2250_v13, %v1890_v12 }
 0x16f   :  { %v1303_v4 = vadd.f32 %v1302_v60, %v943_v52  ;;  %v1485_v5 = vadd.f32 %v1484_v61, %v1123_v53 }
 0x171   :  { %v1304_v10 = vadd.f32 %v1303_v4, %v944_v58  ;;  %v1486_v11 = vadd.f32 %v1485_v5, %v1124_v59  ;;  %v953_v58 = vmul.f32 %v2241_v41, %v1881_v40  ;;  %v1133_v59 = vadd.f32 %v2241_v41, %v1881_v40 }
 0x172   :  { %v1889_v4 = vunpack.c.l.bf16 %v2342_v56  ;;  %v2249_v5 = vunpack.c.l.bf16 %v2431_v57 }
 0x173   :  { %v1305_v18 = vadd.f32 %v1304_v10, %v945_v2  ;;  %v1487_v19 = vadd.f32 %v1486_v11, %v1125_v3 }
 0x174   :  { %v957_v20 = vmul.f32 %v2249_v5, %v1889_v4  ;;  %v1137_v21 = vadd.f32 %v2249_v5, %v1889_v4 }
 0x175   :  { %v1306_v24 = vadd.f32 %v1305_v18, %v946_v8  ;;  %v1488_v25 = vadd.f32 %v1487_v19, %v1126_v9  ;;  %v955_v8 = vmul.f32 %v2245_v55, %v1885_v54  ;;  %v1135_v9 = vadd.f32 %v2245_v55, %v1885_v54 }
 0x176   :  { %v1893_v18 = vunpack.c.l.bf16 %v2343_v6  ;;  %v2253_v19 = vunpack.c.l.bf16 %v2432_v7 }
 0x177   :  { %v1307_v32 = vadd.f32 %v1306_v24, %v947_v16  ;;  %v1489_v33 = vadd.f32 %v1488_v25, %v1127_v17  ;;  %v1894_v24 = vunpack.c.h.bf16 %v2343_v6  ;;  %v2254_v25 = vunpack.c.h.bf16 %v2432_v7 }
 0x179   :  { %v1308_v38 = vadd.f32 %v1307_v32, %v948_v22  ;;  %v1490_v39 = vadd.f32 %v1489_v33, %v1128_v23  ;;  %v960_v34 = vmul.f32 %v2254_v25, %v1894_v24  ;;  %v1140_v35 = vadd.f32 %v2254_v25, %v1894_v24 }
 0x17b   :  { %v1309_v46 = vadd.f32 %v1308_v38, %v949_v30  ;;  %v1491_v47 = vadd.f32 %v1490_v39, %v1129_v31  ;;  %v959_v30 = vmul.f32 %v2253_v19, %v1893_v18  ;;  %v1139_v31 = vadd.f32 %v2253_v19, %v1893_v18 }
 0x17d   :  { %v1310_v52 = vadd.f32 %v1309_v46, %v950_v36  ;;  %v1492_v53 = vadd.f32 %v1491_v47, %v1130_v37 }
 0x17f   :  { %v1311_v60 = vadd.f32 %v1310_v52, %v951_v44  ;;  %v1493_v61 = vadd.f32 %v1492_v53, %v1131_v45 }
 0x181   :  { %v1312_v2 = vadd.f32 %v1311_v60, %v952_v50  ;;  %v1494_v3 = vadd.f32 %v1493_v61, %v1132_v51 }
 0x183   :  { %v1313_v10 = vadd.f32 %v1312_v2, %v953_v58  ;;  %v1495_v11 = vadd.f32 %v1494_v3, %v1133_v59 }
 0x185   :  { %v1314_v16 = vadd.f32 %v1313_v10, %v954_v0  ;;  %v1496_v17 = vadd.f32 %v1495_v11, %v1134_v1 }
 0x187   :  { %v1315_v22 = vadd.f32 %v1314_v16, %v955_v8  ;;  %v1497_v23 = vadd.f32 %v1496_v17, %v1135_v9 }
 0x189   :  { %v1316_v28 = vadd.f32 %v1315_v22, %v956_v14  ;;  %v1498_v29 = vadd.f32 %v1497_v23, %v1136_v15 }
 0x18b   :  { %v1317_v32 = vadd.f32 %v1316_v28, %v957_v20  ;;  %v1499_v33 = vadd.f32 %v1498_v29, %v1137_v21 }
 0x18d   :  { %v1318_v36 = vadd.f32 %v1317_v32, %v958_v26  ;;  %v1500_v37 = vadd.f32 %v1499_v33, %v1138_v27 }
 0x18f   :  { %v1319_v38 = vadd.f32 %v1318_v36, %v959_v30  ;;  %v1501_v39 = vadd.f32 %v1500_v37, %v1139_v31 }
 0x191   :  { %v1320_v40 = vadd.f32 %v1319_v38, %v960_v34  ;;  %v1502_v41 = vadd.f32 %v1501_v39, %v1140_v35 }
 0x193   :  { %1322 = vst [vmem:[#allocation7] sm:$0xff] %v1320_v40  ;;  %1504 = vst [vmem:[#allocation8] sm:$0xff] %v1502_v41 }
 0x194   :  { %2495 = shalt.err (!%p2492_p6)
}
 0x195   :  { %s2496_s16 = scalar_lea.hbm %s2612_s2, 128 }
 0x196   :  { %p2497_p7 = scmp.ne.s32.totalorder %s2612_s2, %s2496_s16  ;;  %p2500_p8 = scmp.lt.u32.totalorder %s2496_s16, %s2612_s2 }
 0x198   :  { %p2502_p9 = pnand %p2500_p8, %p2497_p7 }
 0x19a   :  { %2505 = shalt.err (!%p2502_p9)
}
 0x19b   :  { %1514 = dma.vmem_to_hbm [thread:$0]  %s1512_s10, 128, %s2612_s2, [#allocation4]  }
 0x19c   :  { %s2506_s23 = scalar_lea.vmem %s1522_s12, 128  ;;  %p2511_p11 = scmp.lt.s32.totalorder %s1522_s12, %s1522_s12 }
 0x19d   :  { %p2507_p10 = scmp.ne.s32.totalorder %s1522_s12, %s2506_s23  ;;  %p2512_p12 = scmp.lt.s32.totalorder %s2506_s23, %s2506_s23 }
 0x19f   :  { %p2513_p13 = por %p2512_p12, %p2511_p11 }
 0x1a1   :  { %p2514_p0 = pnand %p2513_p13, %p2507_p10 }
 0x1a3   :  { %2517 = shalt.err (!%p2514_p0)
}
 0x1a4   :  { %s2518_s26 = scalar_lea.hbm %s2613_s3, 128 }
 0x1a5   :  { %p2519_p1 = scmp.ne.s32.totalorder %s2613_s3, %s2518_s26  ;;  %p2522_p2 = scmp.lt.u32.totalorder %s2518_s26, %s2613_s3 }
 0x1a7   :  { %p2524_p3 = pnand %p2522_p2, %p2519_p1 }
 0x1a9   :  { %2527 = shalt.err (!%p2524_p3)
}
 0x1aa   :  { %1524 = dma.vmem_to_hbm [thread:$0]  %s1522_s12, 128, %s2613_s3, [#allocation9]  }
 0x1ab   :  { %2532 = dma.done.wait [#allocation4], 128  }
 0x1ac   :  { %2533 = vsyncadd [#allocation4], 4294967168 }
 0x1ad   :  { %2534 = dma.done.wait [#allocation9], 128  }
 0x1ae   :  { %2535 = vsyncadd [#allocation9], 4294967168 }
 0x1af   :  { %1531 = vsyncpa [#allocation3], 1 }
 0x1b0   :  { %1532 = vsyncpa [#allocation6], 1 }
 0x1b1   :  { %1533 = vsyncpa [#allocation4], 1 }
 0x1b2   :  { %1534 = vsyncpa [#allocation9], 1 }

</bundles_post_ra>
